<compile_context>
chip_gen: v6e
topology: v6e:2x2x1
jax: 0.10.0
libtpu: 0.0.40
codegen_flags: <defaults>
</compile_context>

<pallas_src>
import functools

import jax
import jax.numpy as jnp
import numpy as np
from jax.experimental import pallas as pl
from jax.experimental.pallas import tpu as pltpu

K1 = 1
K2 = 19


def _gelu_exact(t):
    # PyTorch nn.GELU() default = exact erf formulation.
    return 0.5 * t * (1.0 + jax.lax.erf(t * jnp.float32(0.7071067811865476)))


def _row_tap_sum(p, coeffs, H, n_acc=4):
    """Depthwise conv along rows of a zero-padded folded slab.

    p: (H + K - 1, WC) zero-padded rows; coeffs: (K, WC) lane-folded taps.
    Uses round-robin partial accumulators (initialized from the first taps)
    so independent taps can co-issue on the VALU.
    """
    K = coeffs.shape[0]
    accs = []
    for i in range(K):
        tap = p[i:i + H, :] * coeffs[i]
        if len(accs) < n_acc:
            accs.append(tap)
        else:
            accs[i % n_acc] = accs[i % n_acc] + tap
    while len(accs) > 1:
        nxt = [accs[k] + accs[k + 1] for k in range(0, len(accs) - 1, 2)]
        if len(accs) % 2:
            nxt.append(accs[-1])
        accs = nxt
    return accs[0]


def strip_attention_kernel(x_ref,
                           w1_ref, b1_ref,      # proj_1 (1x1, block-diagonal)
                           m5_ref, b5_ref,      # conv0 (dw 5x5): 5 banded W-mats
                           msp1_ref, bs1_ref,   # conv_spatial1 (dw 1x19): banded
                           ks2_ref, bs2_ref,    # conv_spatial2 (dw 19x1): row taps
                           wc1_ref, bc1_ref,    # conv1 (1x1, block-diagonal)
                           w2_ref, b2_ref,      # proj_2 (1x1, block-diagonal)
                           o_ref):
    x = x_ref[0]                       # (H, W*C) folded, lane-dense
    H, WC = x.shape

    # ---- proj_1 (1x1 conv == block-diag matmul in folded layout) + GELU ----
    t = jnp.dot(x, w1_ref[...], preferred_element_type=jnp.float32) + b1_ref[...]
    t = _gelu_exact(t)                 # gating input of StripBlock

    # ---- conv0: depthwise 5x5, pad 2.  Row shifts on the leading axis,
    #      W-mixing per row-offset via a banded (WC, WC) matmul. ----
    zh2 = jnp.zeros((2, WC), jnp.float32)
    tp = jnp.concatenate([zh2, t, zh2], axis=0)            # (H+4, WC)
    acc = [None, None]
    for i in range(5):
        d = jnp.dot(tp[i:i + H, :], m5_ref[i],
                    preferred_element_type=jnp.float32)
        s = i % 2
        acc[s] = d if acc[s] is None else acc[s] + d
    a = acc[0] + acc[1] + b5_ref[...]

    # ---- conv_spatial1: depthwise (1, 19), pad (0, 9) == one banded matmul ----
    a = jnp.dot(a, msp1_ref[...], preferred_element_type=jnp.float32) + bs1_ref[...]

    # ---- conv_spatial2: depthwise (19, 1), pad (9, 0) == 19 row-shift taps ----
    zh9 = jnp.zeros((K2 // 2, WC), jnp.float32)
    ap = jnp.concatenate([zh9, a, zh9], axis=0)            # (H+18, WC)
    a = _row_tap_sum(ap, ks2_ref[...], H) + bs2_ref[...]

    # ---- conv1 (1x1) + StripBlock gating ----
    attn = jnp.dot(a, wc1_ref[...], preferred_element_type=jnp.float32) + bc1_ref[...]
    gated = t * attn

    # ---- proj_2 (1x1) + residual ----
    out = jnp.dot(gated, w2_ref[...], preferred_element_type=jnp.float32) + b2_ref[...]
    o_ref[0] = out + x                 # lane-dense (unmasked) store


def _full_spec(shape):
    nd = len(shape)
    if nd == 2:
        return pl.BlockSpec(shape, lambda b: (0, 0))
    if nd == 3:
        return pl.BlockSpec(shape, lambda b: (0, 0, 0))
    raise ValueError(shape)


def _band_matrix(taps, W):
    """Banded (W*C, W*C) matrix for a depthwise conv along W in folded layout.

    taps: (Kw, C) per-channel coefficients (cross-correlation, center Kw//2,
    zero padding), so that (x_folded @ M)[h, w'*C + c] =
        sum_j x[h, w' + j - Kw//2, c] * taps[j, c].
    """
    Kw, C = taps.shape
    w = jnp.arange(W)
    jj = w[:, None] - w[None, :] + Kw // 2                     # (W, W) tap index
    valid = (jj >= 0) & (jj < Kw)
    coeff = jnp.where(valid[:, :, None],
                      taps[jnp.clip(jj, 0, Kw - 1)], 0.0)      # (W, W, C)
    eye_c = jnp.eye(C, dtype=taps.dtype)
    m4 = coeff[:, None, :, :] * eye_c[None, :, None, :]        # (W, C, W, C)
    return m4.reshape(W * C, W * C)


@jax.jit
def strip_attention(x_nhwc, params):
    """x_nhwc: (B, H, W, C) f32.  params hold the torch-layout weights."""
    (w1, b1, k5, b5, ks1, bs1, ks2, bs2, wc1, bc1, w2, b2) = params
    B, H, W, C = x_nhwc.shape
    WC = W * C

    # Wrapper-side layout plumbing: fold per-channel weights along the lane
    # dim (tile over W), turn the 1x1-conv weights into block-diagonal
    # kron(I_W, w) matrices and the W-direction depthwise convs into banded
    # (WC, WC) matrices so the kernel works entirely in (H, W*C) layout.
    eye_w = jnp.eye(W, dtype=jnp.float32)
    bd = lambda w: jnp.kron(eye_w, w)            # (WC, WC) block-diagonal
    tile_b = lambda v: jnp.tile(v, (1, W))       # (1, WC)
    m5 = jnp.stack([_band_matrix(k5[i], W) for i in range(5)], axis=0)
    msp1 = _band_matrix(ks1, W)
    folded = (
        bd(w1), tile_b(b1),
        m5, tile_b(b5),
        msp1, tile_b(bs1),
        jnp.tile(ks2, (1, W)), tile_b(bs2),
        bd(wc1), tile_b(bc1),
        bd(w2), tile_b(b2),
    )
    x_f = x_nhwc.reshape(B, H, WC)

    in_specs = [pl.BlockSpec((1, H, WC), lambda b: (b, 0, 0))]
    in_specs += [_full_spec(p.shape) for p in folded]

    out_f = pl.pallas_call(
        strip_attention_kernel,
        out_shape=jax.ShapeDtypeStruct((B, H, WC), jnp.float32),
        grid=(B,),
        in_specs=in_specs,
        out_specs=pl.BlockSpec((1, H, WC), lambda b: (b, 0, 0)),
        compiler_params=pltpu.CompilerParams(
            dimension_semantics=("parallel",),
            vmem_limit_bytes=32 * 1024 * 1024),
    )(x_f, *folded)
    return out_f.reshape(B, H, W, C)


# ------------------------- pure-JAX reference -------------------------
def _conv1x1(x, w, b):  # x: NHWC, w: (Cin, Cout), b: (1, Cout)
    y = jax.lax.conv_general_dilated(
        x, w.reshape(1, 1, *w.shape), (1, 1), ((0, 0), (0, 0)),
        dimension_numbers=("NHWC", "HWIO", "NHWC"))
    return y + b


def _dwconv(x, k_hwc, b, pad):  # k_hwc: (kh, kw, C), depthwise
    kh, kw, C = k_hwc.shape
    y = jax.lax.conv_general_dilated(
        x, k_hwc.reshape(kh, kw, 1, C), (1, 1), pad,
        dimension_numbers=("NHWC", "HWIO", "NHWC"),
        feature_group_count=C)
    return y + b


def reference(x_nhwc, params):
    (w1, b1, k5, b5, ks1, bs1, ks2, bs2, wc1, bc1, w2, b2) = params
    t = _conv1x1(x_nhwc, w1, b1)
    g = _gelu_exact(t)
    a = _dwconv(g, k5, b5, ((2, 2), (2, 2)))
    a = _dwconv(a, ks1.reshape(1, K2, -1), bs1, ((0, 0), (K2 // 2, K2 // 2)))
    a = _dwconv(a, ks2.reshape(K2, 1, -1), bs2, ((K2 // 2, K2 // 2), (0, 0)))
    attn = _conv1x1(a, wc1, bc1)
    out = _conv1x1(g * attn, w2, b2)
    return out + x_nhwc


# --------------------------------- main --------------------------------
if __name__ == "__main__":
    B, C, H, W = 2, 8, 16, 16

    key = jax.random.PRNGKey(0)
    keys = jax.random.split(key, 16)

    def rnd(k, shape, scale=0.1):
        return jax.random.normal(k, shape, jnp.float32) * scale

    # Deterministic synthetic parameters (shapes follow the torch module).
    params = (
        rnd(keys[0], (C, C)),        # proj_1 weight (as Cin x Cout matmul)
        rnd(keys[1], (1, C)),        # proj_1 bias
        rnd(keys[2], (5, 5, C)),     # conv0 depthwise kernel
        rnd(keys[3], (1, C)),        # conv0 bias
        rnd(keys[4], (K2, C)),       # conv_spatial1 kernel (1 x 19), width taps
        rnd(keys[5], (1, C)),        # conv_spatial1 bias
        rnd(keys[6], (K2, C)),       # conv_spatial2 kernel (19 x 1), height taps
        rnd(keys[7], (1, C)),        # conv_spatial2 bias
        rnd(keys[8], (C, C)),        # conv1 weight
        rnd(keys[9], (1, C)),        # conv1 bias
        rnd(keys[10], (C, C)),       # proj_2 weight
        rnd(keys[11], (1, C)),       # proj_2 bias
    )

    # Input in PyTorch NCHW convention, transposed to kernel NHWC layout.
    x_nchw = jax.random.normal(keys[12], (B, C, H, W), jnp.float32)
    x_nhwc = jnp.transpose(x_nchw, (0, 2, 3, 1))

    out = strip_attention(x_nhwc, params)
    out = jax.block_until_ready(out)

    ref = jax.block_until_ready(reference(x_nhwc, params))
    np.testing.assert_allclose(np.asarray(out), np.asarray(ref),
                               rtol=1e-4, atol=1e-4)

    print("KERNEL_OK")
</pallas_src>

<mosaic_0001>
module attributes {stable_mosaic.version = 11 : i64} {
  func.func @strip_attention_kernel(%arg0: i32, %arg1: memref<1x16x128xf32, #tpu.memory_space<vmem>>, %arg2: memref<128x128xf32, #tpu.memory_space<vmem>>, %arg3: memref<1x128xf32, #tpu.memory_space<vmem>>, %arg4: memref<5x128x128xf32, #tpu.memory_space<vmem>>, %arg5: memref<1x128xf32, #tpu.memory_space<vmem>>, %arg6: memref<128x128xf32, #tpu.memory_space<vmem>>, %arg7: memref<1x128xf32, #tpu.memory_space<vmem>>, %arg8: memref<19x128xf32, #tpu.memory_space<vmem>>, %arg9: memref<1x128xf32, #tpu.memory_space<vmem>>, %arg10: memref<128x128xf32, #tpu.memory_space<vmem>>, %arg11: memref<1x128xf32, #tpu.memory_space<vmem>>, %arg12: memref<128x128xf32, #tpu.memory_space<vmem>>, %arg13: memref<1x128xf32, #tpu.memory_space<vmem>>, %arg14: memref<1x16x128xf32, #tpu.memory_space<vmem>>) attributes {dimension_semantics = [#tpu.dimension_semantics<parallel>], iteration_bounds = array<i64: 2>, scalar_prefetch = 0 : i64, scratch_operands = 0 : i64, tpu.core_type = #tpu.core_type<tc>, window_params = [{transform_indices = @transform_0, window_bounds = array<i64: 1, 16, 128>}, {pipeline_mode = #tpu.pipeline_mode<synchronous>, transform_indices = @transform_1, window_bounds = array<i64: 128, 128>}, {pipeline_mode = #tpu.pipeline_mode<synchronous>, transform_indices = @transform_2, window_bounds = array<i64: 1, 128>}, {pipeline_mode = #tpu.pipeline_mode<synchronous>, transform_indices = @transform_3, window_bounds = array<i64: 5, 128, 128>}, {pipeline_mode = #tpu.pipeline_mode<synchronous>, transform_indices = @transform_4, window_bounds = array<i64: 1, 128>}, {pipeline_mode = #tpu.pipeline_mode<synchronous>, transform_indices = @transform_5, window_bounds = array<i64: 128, 128>}, {pipeline_mode = #tpu.pipeline_mode<synchronous>, transform_indices = @transform_6, window_bounds = array<i64: 1, 128>}, {pipeline_mode = #tpu.pipeline_mode<synchronous>, transform_indices = @transform_7, window_bounds = array<i64: 19, 128>}, {pipeline_mode = #tpu.pipeline_mode<synchronous>, transform_indices = @transform_8, window_bounds = array<i64: 1, 128>}, {pipeline_mode = #tpu.pipeline_mode<synchronous>, transform_indices = @transform_9, window_bounds = array<i64: 128, 128>}, {pipeline_mode = #tpu.pipeline_mode<synchronous>, transform_indices = @transform_10, window_bounds = array<i64: 1, 128>}, {pipeline_mode = #tpu.pipeline_mode<synchronous>, transform_indices = @transform_11, window_bounds = array<i64: 128, 128>}, {pipeline_mode = #tpu.pipeline_mode<synchronous>, transform_indices = @transform_12, window_bounds = array<i64: 1, 128>}, {transform_indices = @transform_13, window_bounds = array<i64: 1, 16, 128>}]} {
    %c0 = arith.constant 0 : index
    %c0_0 = arith.constant 0 : index
    %c0_1 = arith.constant 0 : index
    %0 = vector.load %arg1[%c0, %c0_0, %c0_1] : memref<1x16x128xf32, #tpu.memory_space<vmem>>, vector<1x16x128xf32>
    %1 = vector.shape_cast %0 : vector<1x16x128xf32> to vector<16x128xf32>
    %c0_2 = arith.constant 0 : index
    %c0_3 = arith.constant 0 : index
    %2 = vector.load %arg2[%c0_2, %c0_3] : memref<128x128xf32, #tpu.memory_space<vmem>>, vector<128x128xf32>
    %cst = arith.constant dense<0.000000e+00> : vector<16x128xf32>
    %3 = tpu.matmul %1, %2, %cst {dimension_numbers = #tpu.dot_dimension_numbers<[1], [0], [0], [1], [0, 0, 1, 1], [], []>} : vector<16x128xf32>, vector<128x128xf32>, vector<16x128xf32> -> vector<16x128xf32>
    %c0_4 = arith.constant 0 : index
    %c0_5 = arith.constant 0 : index
    %4 = vector.load %arg3[%c0_4, %c0_5] : memref<1x128xf32, #tpu.memory_space<vmem>>, vector<1x128xf32>
    %5 = vector.broadcast %4 : vector<1x128xf32> to vector<16x128xf32>
    %6 = arith.addf %3, %5 : vector<16x128xf32>
    %cst_6 = arith.constant 5.000000e-01 : f32
    %7 = vector.broadcast %cst_6 : f32 to vector<16x128xf32>
    %8 = arith.mulf %7, %6 : vector<16x128xf32>
    %cst_7 = arith.constant 0.707106769 : f32
    %9 = vector.broadcast %cst_7 : f32 to vector<16x128xf32>
    %10 = arith.mulf %6, %9 : vector<16x128xf32>
    %11 = math.erf %10 : vector<16x128xf32>
    %cst_8 = arith.constant 1.000000e+00 : f32
    %12 = vector.broadcast %cst_8 : f32 to vector<16x128xf32>
    %13 = arith.addf %12, %11 : vector<16x128xf32>
    %14 = arith.mulf %8, %13 : vector<16x128xf32>
    %cst_9 = arith.constant 0.000000e+00 : f32
    %15 = vector.broadcast %cst_9 : f32 to vector<2x128xf32>
    %16 = tpu.concatenate %15, %14, %15 in 0 : vector<2x128xf32>, vector<16x128xf32>, vector<2x128xf32> -> vector<20x128xf32>
    %17 = vector.extract_strided_slice %16 {offsets = [0, 0], sizes = [16, 128], strides = [1, 1]} : vector<20x128xf32> to vector<16x128xf32>
    %c0_10 = arith.constant 0 : index
    %c0_11 = arith.constant 0 : index
    %c0_12 = arith.constant 0 : index
    %18 = vector.load %arg4[%c0_10, %c0_11, %c0_12] : memref<5x128x128xf32, #tpu.memory_space<vmem>>, vector<1x128x128xf32>
    %19 = vector.shape_cast %18 : vector<1x128x128xf32> to vector<128x128xf32>
    %cst_13 = arith.constant dense<0.000000e+00> : vector<16x128xf32>
    %20 = tpu.matmul %17, %19, %cst_13 {dimension_numbers = #tpu.dot_dimension_numbers<[1], [0], [0], [1], [0, 0, 1, 1], [], []>} : vector<16x128xf32>, vector<128x128xf32>, vector<16x128xf32> -> vector<16x128xf32>
    %21 = vector.extract_strided_slice %16 {offsets = [1, 0], sizes = [16, 128], strides = [1, 1]} : vector<20x128xf32> to vector<16x128xf32>
    %c1 = arith.constant 1 : index
    %c0_14 = arith.constant 0 : index
    %c0_15 = arith.constant 0 : index
    %22 = vector.load %arg4[%c1, %c0_14, %c0_15] : memref<5x128x128xf32, #tpu.memory_space<vmem>>, vector<1x128x128xf32>
    %23 = vector.shape_cast %22 : vector<1x128x128xf32> to vector<128x128xf32>
    %cst_16 = arith.constant dense<0.000000e+00> : vector<16x128xf32>
    %24 = tpu.matmul %21, %23, %cst_16 {dimension_numbers = #tpu.dot_dimension_numbers<[1], [0], [0], [1], [0, 0, 1, 1], [], []>} : vector<16x128xf32>, vector<128x128xf32>, vector<16x128xf32> -> vector<16x128xf32>
    %25 = vector.extract_strided_slice %16 {offsets = [2, 0], sizes = [16, 128], strides = [1, 1]} : vector<20x128xf32> to vector<16x128xf32>
    %c2 = arith.constant 2 : index
    %c0_17 = arith.constant 0 : index
    %c0_18 = arith.constant 0 : index
    %26 = vector.load %arg4[%c2, %c0_17, %c0_18] : memref<5x128x128xf32, #tpu.memory_space<vmem>>, vector<1x128x128xf32>
    %27 = vector.shape_cast %26 : vector<1x128x128xf32> to vector<128x128xf32>
    %cst_19 = arith.constant dense<0.000000e+00> : vector<16x128xf32>
    %28 = tpu.matmul %25, %27, %cst_19 {dimension_numbers = #tpu.dot_dimension_numbers<[1], [0], [0], [1], [0, 0, 1, 1], [], []>} : vector<16x128xf32>, vector<128x128xf32>, vector<16x128xf32> -> vector<16x128xf32>
    %29 = arith.addf %20, %28 : vector<16x128xf32>
    %30 = vector.extract_strided_slice %16 {offsets = [3, 0], sizes = [16, 128], strides = [1, 1]} : vector<20x128xf32> to vector<16x128xf32>
    %c3 = arith.constant 3 : index
    %c0_20 = arith.constant 0 : index
    %c0_21 = arith.constant 0 : index
    %31 = vector.load %arg4[%c3, %c0_20, %c0_21] : memref<5x128x128xf32, #tpu.memory_space<vmem>>, vector<1x128x128xf32>
    %32 = vector.shape_cast %31 : vector<1x128x128xf32> to vector<128x128xf32>
    %cst_22 = arith.constant dense<0.000000e+00> : vector<16x128xf32>
    %33 = tpu.matmul %30, %32, %cst_22 {dimension_numbers = #tpu.dot_dimension_numbers<[1], [0], [0], [1], [0, 0, 1, 1], [], []>} : vector<16x128xf32>, vector<128x128xf32>, vector<16x128xf32> -> vector<16x128xf32>
    %34 = arith.addf %24, %33 : vector<16x128xf32>
    %35 = vector.extract_strided_slice %16 {offsets = [4, 0], sizes = [16, 128], strides = [1, 1]} : vector<20x128xf32> to vector<16x128xf32>
    %c4 = arith.constant 4 : index
    %c0_23 = arith.constant 0 : index
    %c0_24 = arith.constant 0 : index
    %36 = vector.load %arg4[%c4, %c0_23, %c0_24] : memref<5x128x128xf32, #tpu.memory_space<vmem>>, vector<1x128x128xf32>
    %37 = vector.shape_cast %36 : vector<1x128x128xf32> to vector<128x128xf32>
    %cst_25 = arith.constant dense<0.000000e+00> : vector<16x128xf32>
    %38 = tpu.matmul %35, %37, %cst_25 {dimension_numbers = #tpu.dot_dimension_numbers<[1], [0], [0], [1], [0, 0, 1, 1], [], []>} : vector<16x128xf32>, vector<128x128xf32>, vector<16x128xf32> -> vector<16x128xf32>
    %39 = arith.addf %29, %38 : vector<16x128xf32>
    %40 = arith.addf %39, %34 : vector<16x128xf32>
    %c0_26 = arith.constant 0 : index
    %c0_27 = arith.constant 0 : index
    %41 = vector.load %arg5[%c0_26, %c0_27] : memref<1x128xf32, #tpu.memory_space<vmem>>, vector<1x128xf32>
    %42 = vector.broadcast %41 : vector<1x128xf32> to vector<16x128xf32>
    %43 = arith.addf %40, %42 : vector<16x128xf32>
    %c0_28 = arith.constant 0 : index
    %c0_29 = arith.constant 0 : index
    %44 = vector.load %arg6[%c0_28, %c0_29] : memref<128x128xf32, #tpu.memory_space<vmem>>, vector<128x128xf32>
    %cst_30 = arith.constant dense<0.000000e+00> : vector<16x128xf32>
    %45 = tpu.matmul %43, %44, %cst_30 {dimension_numbers = #tpu.dot_dimension_numbers<[1], [0], [0], [1], [0, 0, 1, 1], [], []>} : vector<16x128xf32>, vector<128x128xf32>, vector<16x128xf32> -> vector<16x128xf32>
    %c0_31 = arith.constant 0 : index
    %c0_32 = arith.constant 0 : index
    %46 = vector.load %arg7[%c0_31, %c0_32] : memref<1x128xf32, #tpu.memory_space<vmem>>, vector<1x128xf32>
    %47 = vector.broadcast %46 : vector<1x128xf32> to vector<16x128xf32>
    %48 = arith.addf %45, %47 : vector<16x128xf32>
    %cst_33 = arith.constant 0.000000e+00 : f32
    %49 = vector.broadcast %cst_33 : f32 to vector<9x128xf32>
    %50 = tpu.concatenate %49, %48, %49 in 0 : vector<9x128xf32>, vector<16x128xf32>, vector<9x128xf32> -> vector<34x128xf32>
    %c0_34 = arith.constant 0 : index
    %c0_35 = arith.constant 0 : index
    %51 = vector.load %arg8[%c0_34, %c0_35] : memref<19x128xf32, #tpu.memory_space<vmem>>, vector<19x128xf32>
    %52 = vector.extract_strided_slice %50 {offsets = [0, 0], sizes = [16, 128], strides = [1, 1]} : vector<34x128xf32> to vector<16x128xf32>
    %53 = vector.extract_strided_slice %51 {offsets = [0, 0], sizes = [1, 128], strides = [1, 1]} : vector<19x128xf32> to vector<1x128xf32>
    %54 = vector.shape_cast %53 : vector<1x128xf32> to vector<128xf32>
    %55 = vector.shape_cast %54 : vector<128xf32> to vector<1x128xf32>
    %56 = vector.broadcast %55 : vector<1x128xf32> to vector<16x128xf32>
    %57 = arith.mulf %52, %56 : vector<16x128xf32>
    %58 = vector.extract_strided_slice %50 {offsets = [1, 0], sizes = [16, 128], strides = [1, 1]} : vector<34x128xf32> to vector<16x128xf32>
    %59 = vector.extract_strided_slice %51 {offsets = [1, 0], sizes = [1, 128], strides = [1, 1]} : vector<19x128xf32> to vector<1x128xf32>
    %60 = vector.shape_cast %59 : vector<1x128xf32> to vector<128xf32>
    %61 = vector.shape_cast %60 : vector<128xf32> to vector<1x128xf32>
    %62 = vector.broadcast %61 : vector<1x128xf32> to vector<16x128xf32>
    %63 = arith.mulf %58, %62 : vector<16x128xf32>
    %64 = vector.extract_strided_slice %50 {offsets = [2, 0], sizes = [16, 128], strides = [1, 1]} : vector<34x128xf32> to vector<16x128xf32>
    %65 = vector.extract_strided_slice %51 {offsets = [2, 0], sizes = [1, 128], strides = [1, 1]} : vector<19x128xf32> to vector<1x128xf32>
    %66 = vector.shape_cast %65 : vector<1x128xf32> to vector<128xf32>
    %67 = vector.shape_cast %66 : vector<128xf32> to vector<1x128xf32>
    %68 = vector.broadcast %67 : vector<1x128xf32> to vector<16x128xf32>
    %69 = arith.mulf %64, %68 : vector<16x128xf32>
    %70 = vector.extract_strided_slice %50 {offsets = [3, 0], sizes = [16, 128], strides = [1, 1]} : vector<34x128xf32> to vector<16x128xf32>
    %71 = vector.extract_strided_slice %51 {offsets = [3, 0], sizes = [1, 128], strides = [1, 1]} : vector<19x128xf32> to vector<1x128xf32>
    %72 = vector.shape_cast %71 : vector<1x128xf32> to vector<128xf32>
    %73 = vector.shape_cast %72 : vector<128xf32> to vector<1x128xf32>
    %74 = vector.broadcast %73 : vector<1x128xf32> to vector<16x128xf32>
    %75 = arith.mulf %70, %74 : vector<16x128xf32>
    %76 = vector.extract_strided_slice %50 {offsets = [4, 0], sizes = [16, 128], strides = [1, 1]} : vector<34x128xf32> to vector<16x128xf32>
    %77 = vector.extract_strided_slice %51 {offsets = [4, 0], sizes = [1, 128], strides = [1, 1]} : vector<19x128xf32> to vector<1x128xf32>
    %78 = vector.shape_cast %77 : vector<1x128xf32> to vector<128xf32>
    %79 = vector.shape_cast %78 : vector<128xf32> to vector<1x128xf32>
    %80 = vector.broadcast %79 : vector<1x128xf32> to vector<16x128xf32>
    %81 = arith.mulf %76, %80 : vector<16x128xf32>
    %82 = arith.addf %57, %81 : vector<16x128xf32>
    %83 = vector.extract_strided_slice %50 {offsets = [5, 0], sizes = [16, 128], strides = [1, 1]} : vector<34x128xf32> to vector<16x128xf32>
    %84 = vector.extract_strided_slice %51 {offsets = [5, 0], sizes = [1, 128], strides = [1, 1]} : vector<19x128xf32> to vector<1x128xf32>
    %85 = vector.shape_cast %84 : vector<1x128xf32> to vector<128xf32>
    %86 = vector.shape_cast %85 : vector<128xf32> to vector<1x128xf32>
    %87 = vector.broadcast %86 : vector<1x128xf32> to vector<16x128xf32>
    %88 = arith.mulf %83, %87 : vector<16x128xf32>
    %89 = arith.addf %63, %88 : vector<16x128xf32>
    %90 = vector.extract_strided_slice %50 {offsets = [6, 0], sizes = [16, 128], strides = [1, 1]} : vector<34x128xf32> to vector<16x128xf32>
    %91 = vector.extract_strided_slice %51 {offsets = [6, 0], sizes = [1, 128], strides = [1, 1]} : vector<19x128xf32> to vector<1x128xf32>
    %92 = vector.shape_cast %91 : vector<1x128xf32> to vector<128xf32>
    %93 = vector.shape_cast %92 : vector<128xf32> to vector<1x128xf32>
    %94 = vector.broadcast %93 : vector<1x128xf32> to vector<16x128xf32>
    %95 = arith.mulf %90, %94 : vector<16x128xf32>
    %96 = arith.addf %69, %95 : vector<16x128xf32>
    %97 = vector.extract_strided_slice %50 {offsets = [7, 0], sizes = [16, 128], strides = [1, 1]} : vector<34x128xf32> to vector<16x128xf32>
    %98 = vector.extract_strided_slice %51 {offsets = [7, 0], sizes = [1, 128], strides = [1, 1]} : vector<19x128xf32> to vector<1x128xf32>
    %99 = vector.shape_cast %98 : vector<1x128xf32> to vector<128xf32>
    %100 = vector.shape_cast %99 : vector<128xf32> to vector<1x128xf32>
    %101 = vector.broadcast %100 : vector<1x128xf32> to vector<16x128xf32>
    %102 = arith.mulf %97, %101 : vector<16x128xf32>
    %103 = arith.addf %75, %102 : vector<16x128xf32>
    %104 = vector.extract_strided_slice %50 {offsets = [8, 0], sizes = [16, 128], strides = [1, 1]} : vector<34x128xf32> to vector<16x128xf32>
    %105 = vector.extract_strided_slice %51 {offsets = [8, 0], sizes = [1, 128], strides = [1, 1]} : vector<19x128xf32> to vector<1x128xf32>
    %106 = vector.shape_cast %105 : vector<1x128xf32> to vector<128xf32>
    %107 = vector.shape_cast %106 : vector<128xf32> to vector<1x128xf32>
    %108 = vector.broadcast %107 : vector<1x128xf32> to vector<16x128xf32>
    %109 = arith.mulf %104, %108 : vector<16x128xf32>
    %110 = arith.addf %82, %109 : vector<16x128xf32>
    %111 = vector.extract_strided_slice %50 {offsets = [9, 0], sizes = [16, 128], strides = [1, 1]} : vector<34x128xf32> to vector<16x128xf32>
    %112 = vector.extract_strided_slice %51 {offsets = [9, 0], sizes = [1, 128], strides = [1, 1]} : vector<19x128xf32> to vector<1x128xf32>
    %113 = vector.shape_cast %112 : vector<1x128xf32> to vector<128xf32>
    %114 = vector.shape_cast %113 : vector<128xf32> to vector<1x128xf32>
    %115 = vector.broadcast %114 : vector<1x128xf32> to vector<16x128xf32>
    %116 = arith.mulf %111, %115 : vector<16x128xf32>
    %117 = arith.addf %89, %116 : vector<16x128xf32>
    %118 = vector.extract_strided_slice %50 {offsets = [10, 0], sizes = [16, 128], strides = [1, 1]} : vector<34x128xf32> to vector<16x128xf32>
    %119 = vector.extract_strided_slice %51 {offsets = [10, 0], sizes = [1, 128], strides = [1, 1]} : vector<19x128xf32> to vector<1x128xf32>
    %120 = vector.shape_cast %119 : vector<1x128xf32> to vector<128xf32>
    %121 = vector.shape_cast %120 : vector<128xf32> to vector<1x128xf32>
    %122 = vector.broadcast %121 : vector<1x128xf32> to vector<16x128xf32>
    %123 = arith.mulf %118, %122 : vector<16x128xf32>
    %124 = arith.addf %96, %123 : vector<16x128xf32>
    %125 = vector.extract_strided_slice %50 {offsets = [11, 0], sizes = [16, 128], strides = [1, 1]} : vector<34x128xf32> to vector<16x128xf32>
    %126 = vector.extract_strided_slice %51 {offsets = [11, 0], sizes = [1, 128], strides = [1, 1]} : vector<19x128xf32> to vector<1x128xf32>
    %127 = vector.shape_cast %126 : vector<1x128xf32> to vector<128xf32>
    %128 = vector.shape_cast %127 : vector<128xf32> to vector<1x128xf32>
    %129 = vector.broadcast %128 : vector<1x128xf32> to vector<16x128xf32>
    %130 = arith.mulf %125, %129 : vector<16x128xf32>
    %131 = arith.addf %103, %130 : vector<16x128xf32>
    %132 = vector.extract_strided_slice %50 {offsets = [12, 0], sizes = [16, 128], strides = [1, 1]} : vector<34x128xf32> to vector<16x128xf32>
    %133 = vector.extract_strided_slice %51 {offsets = [12, 0], sizes = [1, 128], strides = [1, 1]} : vector<19x128xf32> to vector<1x128xf32>
    %134 = vector.shape_cast %133 : vector<1x128xf32> to vector<128xf32>
    %135 = vector.shape_cast %134 : vector<128xf32> to vector<1x128xf32>
    %136 = vector.broadcast %135 : vector<1x128xf32> to vector<16x128xf32>
    %137 = arith.mulf %132, %136 : vector<16x128xf32>
    %138 = arith.addf %110, %137 : vector<16x128xf32>
    %139 = vector.extract_strided_slice %50 {offsets = [13, 0], sizes = [16, 128], strides = [1, 1]} : vector<34x128xf32> to vector<16x128xf32>
    %140 = vector.extract_strided_slice %51 {offsets = [13, 0], sizes = [1, 128], strides = [1, 1]} : vector<19x128xf32> to vector<1x128xf32>
    %141 = vector.shape_cast %140 : vector<1x128xf32> to vector<128xf32>
    %142 = vector.shape_cast %141 : vector<128xf32> to vector<1x128xf32>
    %143 = vector.broadcast %142 : vector<1x128xf32> to vector<16x128xf32>
    %144 = arith.mulf %139, %143 : vector<16x128xf32>
    %145 = arith.addf %117, %144 : vector<16x128xf32>
    %146 = vector.extract_strided_slice %50 {offsets = [14, 0], sizes = [16, 128], strides = [1, 1]} : vector<34x128xf32> to vector<16x128xf32>
    %147 = vector.extract_strided_slice %51 {offsets = [14, 0], sizes = [1, 128], strides = [1, 1]} : vector<19x128xf32> to vector<1x128xf32>
    %148 = vector.shape_cast %147 : vector<1x128xf32> to vector<128xf32>
    %149 = vector.shape_cast %148 : vector<128xf32> to vector<1x128xf32>
    %150 = vector.broadcast %149 : vector<1x128xf32> to vector<16x128xf32>
    %151 = arith.mulf %146, %150 : vector<16x128xf32>
    %152 = arith.addf %124, %151 : vector<16x128xf32>
    %153 = vector.extract_strided_slice %50 {offsets = [15, 0], sizes = [16, 128], strides = [1, 1]} : vector<34x128xf32> to vector<16x128xf32>
    %154 = vector.extract_strided_slice %51 {offsets = [15, 0], sizes = [1, 128], strides = [1, 1]} : vector<19x128xf32> to vector<1x128xf32>
    %155 = vector.shape_cast %154 : vector<1x128xf32> to vector<128xf32>
    %156 = vector.shape_cast %155 : vector<128xf32> to vector<1x128xf32>
    %157 = vector.broadcast %156 : vector<1x128xf32> to vector<16x128xf32>
    %158 = arith.mulf %153, %157 : vector<16x128xf32>
    %159 = arith.addf %131, %158 : vector<16x128xf32>
    %160 = vector.extract_strided_slice %50 {offsets = [16, 0], sizes = [16, 128], strides = [1, 1]} : vector<34x128xf32> to vector<16x128xf32>
    %161 = vector.extract_strided_slice %51 {offsets = [16, 0], sizes = [1, 128], strides = [1, 1]} : vector<19x128xf32> to vector<1x128xf32>
    %162 = vector.shape_cast %161 : vector<1x128xf32> to vector<128xf32>
    %163 = vector.shape_cast %162 : vector<128xf32> to vector<1x128xf32>
    %164 = vector.broadcast %163 : vector<1x128xf32> to vector<16x128xf32>
    %165 = arith.mulf %160, %164 : vector<16x128xf32>
    %166 = arith.addf %138, %165 : vector<16x128xf32>
    %167 = vector.extract_strided_slice %50 {offsets = [17, 0], sizes = [16, 128], strides = [1, 1]} : vector<34x128xf32> to vector<16x128xf32>
    %168 = vector.extract_strided_slice %51 {offsets = [17, 0], sizes = [1, 128], strides = [1, 1]} : vector<19x128xf32> to vector<1x128xf32>
    %169 = vector.shape_cast %168 : vector<1x128xf32> to vector<128xf32>
    %170 = vector.shape_cast %169 : vector<128xf32> to vector<1x128xf32>
    %171 = vector.broadcast %170 : vector<1x128xf32> to vector<16x128xf32>
    %172 = arith.mulf %167, %171 : vector<16x128xf32>
    %173 = arith.addf %145, %172 : vector<16x128xf32>
    %174 = vector.extract_strided_slice %50 {offsets = [18, 0], sizes = [16, 128], strides = [1, 1]} : vector<34x128xf32> to vector<16x128xf32>
    %175 = vector.extract_strided_slice %51 {offsets = [18, 0], sizes = [1, 128], strides = [1, 1]} : vector<19x128xf32> to vector<1x128xf32>
    %176 = vector.shape_cast %175 : vector<1x128xf32> to vector<128xf32>
    %177 = vector.shape_cast %176 : vector<128xf32> to vector<1x128xf32>
    %178 = vector.broadcast %177 : vector<1x128xf32> to vector<16x128xf32>
    %179 = arith.mulf %174, %178 : vector<16x128xf32>
    %180 = arith.addf %152, %179 : vector<16x128xf32>
    %181 = arith.addf %166, %173 : vector<16x128xf32>
    %182 = arith.addf %180, %159 : vector<16x128xf32>
    %183 = arith.addf %181, %182 : vector<16x128xf32>
    %c0_36 = arith.constant 0 : index
    %c0_37 = arith.constant 0 : index
    %184 = vector.load %arg9[%c0_36, %c0_37] : memref<1x128xf32, #tpu.memory_space<vmem>>, vector<1x128xf32>
    %185 = vector.broadcast %184 : vector<1x128xf32> to vector<16x128xf32>
    %186 = arith.addf %183, %185 : vector<16x128xf32>
    %c0_38 = arith.constant 0 : index
    %c0_39 = arith.constant 0 : index
    %187 = vector.load %arg10[%c0_38, %c0_39] : memref<128x128xf32, #tpu.memory_space<vmem>>, vector<128x128xf32>
    %cst_40 = arith.constant dense<0.000000e+00> : vector<16x128xf32>
    %188 = tpu.matmul %186, %187, %cst_40 {dimension_numbers = #tpu.dot_dimension_numbers<[1], [0], [0], [1], [0, 0, 1, 1], [], []>} : vector<16x128xf32>, vector<128x128xf32>, vector<16x128xf32> -> vector<16x128xf32>
    %c0_41 = arith.constant 0 : index
    %c0_42 = arith.constant 0 : index
    %189 = vector.load %arg11[%c0_41, %c0_42] : memref<1x128xf32, #tpu.memory_space<vmem>>, vector<1x128xf32>
    %190 = vector.broadcast %189 : vector<1x128xf32> to vector<16x128xf32>
    %191 = arith.addf %188, %190 : vector<16x128xf32>
    %192 = arith.mulf %14, %191 : vector<16x128xf32>
    %c0_43 = arith.constant 0 : index
    %c0_44 = arith.constant 0 : index
    %193 = vector.load %arg12[%c0_43, %c0_44] : memref<128x128xf32, #tpu.memory_space<vmem>>, vector<128x128xf32>
    %cst_45 = arith.constant dense<0.000000e+00> : vector<16x128xf32>
    %194 = tpu.matmul %192, %193, %cst_45 {dimension_numbers = #tpu.dot_dimension_numbers<[1], [0], [0], [1], [0, 0, 1, 1], [], []>} : vector<16x128xf32>, vector<128x128xf32>, vector<16x128xf32> -> vector<16x128xf32>
    %c0_46 = arith.constant 0 : index
    %c0_47 = arith.constant 0 : index
    %195 = vector.load %arg13[%c0_46, %c0_47] : memref<1x128xf32, #tpu.memory_space<vmem>>, vector<1x128xf32>
    %196 = vector.broadcast %195 : vector<1x128xf32> to vector<16x128xf32>
    %197 = arith.addf %194, %196 : vector<16x128xf32>
    %198 = arith.addf %197, %1 : vector<16x128xf32>
    %c0_48 = arith.constant 0 : index
    %c0_49 = arith.constant 0 : index
    %c0_50 = arith.constant 0 : index
    %199 = vector.load %arg14[%c0_48, %c0_49, %c0_50] : memref<1x16x128xf32, #tpu.memory_space<vmem>>, vector<1x16x128xf32>
    %200 = vector.shape_cast %199 : vector<1x16x128xf32> to vector<16x128xf32>
    %201 = vector.shape_cast %198 : vector<16x128xf32> to vector<1x16x128xf32>
    tpu.vector_store %arg14[%c0_48, %c0_49, %c0_50], %201 {strides = array<i32>} : memref<1x16x128xf32, #tpu.memory_space<vmem>>, vector<1x16x128xf32>,
    return
  }
  func.func @transform_0(%arg0: i32) -> (i32, i32, i32) {
    %c0_i32 = arith.constant 0 : i32
    %c0_i32_0 = arith.constant 0 : i32
    %c0_i32_1 = arith.constant 0 : i32
    return %arg0, %c0_i32, %c0_i32_0 : i32, i32, i32
  }
  func.func @transform_1(%arg0: i32) -> (i32, i32) {
    %c0_i32 = arith.constant 0 : i32
    %c0_i32_0 = arith.constant 0 : i32
    %c0_i32_1 = arith.constant 0 : i32
    return %c0_i32, %c0_i32_0 : i32, i32
  }
  func.func @transform_2(%arg0: i32) -> (i32, i32) {
    %c0_i32 = arith.constant 0 : i32
    %c0_i32_0 = arith.constant 0 : i32
    %c0_i32_1 = arith.constant 0 : i32
    return %c0_i32, %c0_i32_0 : i32, i32
  }
  func.func @transform_3(%arg0: i32) -> (i32, i32, i32) {
    %c0_i32 = arith.constant 0 : i32
    %c0_i32_0 = arith.constant 0 : i32
    %c0_i32_1 = arith.constant 0 : i32
    %c0_i32_2 = arith.constant 0 : i32
    return %c0_i32, %c0_i32_0, %c0_i32_1 : i32, i32, i32
  }
  func.func @transform_4(%arg0: i32) -> (i32, i32) {
    %c0_i32 = arith.constant 0 : i32
    %c0_i32_0 = arith.constant 0 : i32
    %c0_i32_1 = arith.constant 0 : i32
    return %c0_i32, %c0_i32_0 : i32, i32
  }
  func.func @transform_5(%arg0: i32) -> (i32, i32) {
    %c0_i32 = arith.constant 0 : i32
    %c0_i32_0 = arith.constant 0 : i32
    %c0_i32_1 = arith.constant 0 : i32
    return %c0_i32, %c0_i32_0 : i32, i32
  }
  func.func @transform_6(%arg0: i32) -> (i32, i32) {
    %c0_i32 = arith.constant 0 : i32
    %c0_i32_0 = arith.constant 0 : i32
    %c0_i32_1 = arith.constant 0 : i32
    return %c0_i32, %c0_i32_0 : i32, i32
  }
  func.func @transform_7(%arg0: i32) -> (i32, i32) {
    %c0_i32 = arith.constant 0 : i32
    %c0_i32_0 = arith.constant 0 : i32
    %c0_i32_1 = arith.constant 0 : i32
    return %c0_i32, %c0_i32_0 : i32, i32
  }
  func.func @transform_8(%arg0: i32) -> (i32, i32) {
    %c0_i32 = arith.constant 0 : i32
    %c0_i32_0 = arith.constant 0 : i32
    %c0_i32_1 = arith.constant 0 : i32
    return %c0_i32, %c0_i32_0 : i32, i32
  }
  func.func @transform_9(%arg0: i32) -> (i32, i32) {
    %c0_i32 = arith.constant 0 : i32
    %c0_i32_0 = arith.constant 0 : i32
    %c0_i32_1 = arith.constant 0 : i32
    return %c0_i32, %c0_i32_0 : i32, i32
  }
  func.func @transform_10(%arg0: i32) -> (i32, i32) {
    %c0_i32 = arith.constant 0 : i32
    %c0_i32_0 = arith.constant 0 : i32
    %c0_i32_1 = arith.constant 0 : i32
    return %c0_i32, %c0_i32_0 : i32, i32
  }
  func.func @transform_11(%arg0: i32) -> (i32, i32) {
    %c0_i32 = arith.constant 0 : i32
    %c0_i32_0 = arith.constant 0 : i32
    %c0_i32_1 = arith.constant 0 : i32
    return %c0_i32, %c0_i32_0 : i32, i32
  }
  func.func @transform_12(%arg0: i32) -> (i32, i32) {
    %c0_i32 = arith.constant 0 : i32
    %c0_i32_0 = arith.constant 0 : i32
    %c0_i32_1 = arith.constant 0 : i32
    return %c0_i32, %c0_i32_0 : i32, i32
  }
  func.func @transform_13(%arg0: i32) -> (i32, i32, i32) {
    %c0_i32 = arith.constant 0 : i32
    %c0_i32_0 = arith.constant 0 : i32
    %c0_i32_1 = arith.constant 0 : i32
    return %arg0, %c0_i32, %c0_i32_0 : i32, i32, i32
  }
}

</mosaic_0001>

<bundles_post_ra>
// kernel: strip_attention.1
= control target key start
LH: loop header
LB: loop body
LE: loop exit
PB: predicated region body
PF: predicated region fallthrough
CT: control target
= control target key end

     0   :  { %s2395_s25 = smov 0   ;;  %s3109_s0 = inlined_call_operand.vmem [shape: f32[2,16,128], index: 0, kind: input, shape index: {}]   ;;  %s3110_s1 = inlined_call_operand.vmem [shape: f32[128,128], index: 1, kind: input, shape index: {}]   ;;  %s3111_s2 = inlined_call_operand.vmem [shape: f32[1,128], index: 2, kind: input, shape index: {}]   ;;  %s3112_s3 = inlined_call_operand.vmem [shape: f32[5,128,128], index: 3, kind: input, shape index: {}]   ;;  %s3113_s4 = inlined_call_operand.vmem [shape: f32[1,128], index: 4, kind: input, shape index: {}]   ;;  %s3114_s5 = inlined_call_operand.vmem [shape: f32[128,128], index: 5, kind: input, shape index: {}]   ;;  %s3115_s6 = inlined_call_operand.vmem [shape: f32[1,128], index: 6, kind: input, shape index: {}]   ;;  %s3116_s7 = inlined_call_operand.vmem [shape: f32[19,128], index: 7, kind: input, shape index: {}]   ;;  %s3117_s8 = inlined_call_operand.vmem [shape: f32[1,128], index: 8, kind: input, shape index: {}]   ;;  %s3118_s9 = inlined_call_operand.vmem [shape: f32[128,128], index: 9, kind: input, shape index: {}]   ;;  %s3119_s10 = inlined_call_operand.vmem [shape: f32[1,128], index: 10, kind: input, shape index: {}]   ;;  %s3120_s11 = inlined_call_operand.vmem [shape: f32[128,128], index: 11, kind: input, shape index: {}]   ;;  %s3121_s12 = inlined_call_operand.vmem [shape: f32[1,128], index: 12, kind: input, shape index: {}]   ;;  %s3122_s13 = inlined_call_operand.vmem [shape: f32[2,16,128], index: 13, kind: output, shape index: {}]  }
   0x1 LB: > { %s1741_s26 = sadd.s32 4294967295, %s2323_s25   ;;  %p1745_p0 = scmp.ge.s32.totalorder %s2323_s25, 1  ;;  %s2323_s25 = sphi %s2395_s25, %s23_s25  }
   0x2   : > { %p387_p1 = scmp.lt.s32.totalorder %s2323_s25, 3 }
   0x4   : > { %p388_p2 = pnand %p1745_p0, %p387_p1 }
   0x5   : > { %p431_p3 = scmp.lt.s32.totalorder (!%p388_p2), %s1741_s26, 1 }
   0x6   : > { %391 = sbr.rel (%p388_p2) target bundleno = 1177 (0x499), region = 72 }
   0xb   : > { %v458_v0 = vld [vmem:[%s3110_s1 + $0x78] sm:$0xff]  ;;  %v457_v1 = vld [vmem:[%s3110_s1 + $0x70] sm:$0xff]  ;;  %v456_v2 = vld [vmem:[%s3110_s1 + $0x68] sm:$0xff]  ;;  %s3124_s26 = smov (!%p431_p3, %s1741_s26), 1  ;;  %vm553_vm0 = vcmask 1041408   ;;  %vm614_vm2 = vcmask 1045504  }
   0xc   : > { %1988 = vmatprep.subr.mxu0 %v458_v0  ;;  %v455_v3 = vld [vmem:[%s3110_s1 + $0x60] sm:$0xff]  ;;  %s1824_s18 = sshll.u32 %s3124_s26, 4  ;;  %v454_v4 = vld [vmem:[%s3110_s1 + $0x58] sm:$0xff]  ;;  %v453_v7 = vld [vmem:[%s3110_s1 + $0x50] sm:$0xff]  ;;  %vm872_vm3 = vcmask 1046528   ;;  %vm789_vm4 = vcmask 1044480  }
   0xd   : > { %1989 = vmatpush3.msra.mxu0 %v458_v0  ;;  %s2423_s21 = scalar_lea.vmem %s3109_s0, %s1824_s18  ;;  %v1782_v6 = vld [vmem:[%s3112_s3 + $0x178] sm:$0xff]  ;;  %v452_v8 = vld [vmem:[%s3110_s1 + $0x48] sm:$0xff]  ;;  %v451_v9 = vld [vmem:[%s3110_s1 + $0x40] sm:$0xff]  ;;  %vm972_vm5 = vcmask 1043456   ;;  %vm1168_vm6 = vcmask 1040384   ;;  %s440_s23 = scalar_lea.vmem %s3122_s13, %s1824_s18 }
   0xe   : > { %1990 = vmatprep.subr.mxu0 %v457_v1  ;;  %v441_v5 = vld [vmem:[%s2423_s21] sm:$0xff]  ;;  %2023 = vmatprep.subr.mxu1 %v1782_v6  ;;  %v450_v10 = vld [vmem:[%s3110_s1 + $0x38] sm:$0xff]  ;;  %v449_v11 = vld [vmem:[%s3110_s1 + $0x30] sm:$0xff] }
   0xf   : > { %1991 = vmatpush3.msra.mxu0 %v457_v1  ;;  %2020 = vmatprep.mubr.f32.mxu0 %v441_v5  ;;  %v448_v12 = vld [vmem:[%s3110_s1 + $0x28] sm:$0xff]  ;;  %v447_v13 = vld [vmem:[%s3110_s1 + $0x20] sm:$0xff]  ;;  %v446_v14 = vld [vmem:[%s3110_s1 + $0x18] sm:$0xff] }
  0x10   : > { %1992 = vmatprep.subr.mxu0 %v456_v2  ;;  %2024 = vmatpush3.msra.mxu1 %v1782_v6  ;;  %v445_v15 = vld [vmem:[%s3110_s1 + $0x10] sm:$0xff]  ;;  %v444_v16 = vld [vmem:[%s3110_s1 + $0x8] sm:$0xff]  ;;  %v443_v17 = vld [vmem:[%s3110_s1] sm:$0xff] }
  0x11   : > { %1993 = vmatpush3.msra.mxu0 %v456_v2  ;;  %v442_v18 = vld [vmem:[%s2423_s21 + $0x8] sm:$0xff]  ;;  %v577_v19 = vld [vmem:[%s3112_s3 + $0x78] sm:$0xff]  ;;  %v576_v20 = vld [vmem:[%s3112_s3 + $0x70] sm:$0xff] }
  0x12   : > { %1994 = vmatprep.subr.mxu0 %v455_v3  ;;  %v575_v21 = vld [vmem:[%s3112_s3 + $0x68] sm:$0xff]  ;;  %v1781_v22 = vld [vmem:[%s3112_s3 + $0x170] sm:$0xff]  ;;  %v574_v23 = vld [vmem:[%s3112_s3 + $0x60] sm:$0xff] }
  0x13   : > { %1995 = vmatpush3.msra.mxu0 %v455_v3  ;;  %2025 = vmatprep.subr.mxu1 %v1781_v22  ;;  %v1780_v24 = vld [vmem:[%s3112_s3 + $0x168] sm:$0xff]  ;;  %v573_v25 = vld [vmem:[%s3112_s3 + $0x58] sm:$0xff]  ;;  %v1779_v26 = vld [vmem:[%s3112_s3 + $0x160] sm:$0xff] }
  0x14   : > { %1996 = vmatprep.subr.mxu0 %v454_v4  ;;  %2026 = vmatpush3.msra.mxu1 %v1781_v22  ;;  %v572_v27 = vld [vmem:[%s3112_s3 + $0x50] sm:$0xff]  ;;  %v1778_v28 = vld [vmem:[%s3112_s3 + $0x158] sm:$0xff]  ;;  %v571_v29 = vld [vmem:[%s3112_s3 + $0x48] sm:$0xff] }
  0x15   : > { %1997 = vmatpush3.msra.mxu0 %v454_v4  ;;  %2027 = vmatprep.subr.mxu1 %v1780_v24  ;;  %v1777_v30 = vld [vmem:[%s3112_s3 + $0x150] sm:$0xff]  ;;  %v570_v31 = vld [vmem:[%s3112_s3 + $0x40] sm:$0xff]  ;;  %v1776_v32 = vld [vmem:[%s3112_s3 + $0x148] sm:$0xff] }
  0x16   : > { %1998 = vmatprep.subr.mxu0 %v453_v7  ;;  %2028 = vmatpush3.msra.mxu1 %v1780_v24  ;;  %v569_v33 = vld [vmem:[%s3112_s3 + $0x38] sm:$0xff]  ;;  %v1775_v34 = vld [vmem:[%s3112_s3 + $0x140] sm:$0xff]  ;;  %v568_v35 = vld [vmem:[%s3112_s3 + $0x30] sm:$0xff] }
  0x17   : > { %1999 = vmatpush3.msra.mxu0 %v453_v7  ;;  %2029 = vmatprep.subr.mxu1 %v1779_v26  ;;  %v1774_v36 = vld [vmem:[%s3112_s3 + $0x138] sm:$0xff]  ;;  %v567_v37 = vld [vmem:[%s3112_s3 + $0x28] sm:$0xff]  ;;  %v1773_v38 = vld [vmem:[%s3112_s3 + $0x130] sm:$0xff] }
  0x18   : > { %2000 = vmatprep.subr.mxu0 %v452_v8  ;;  %2030 = vmatpush3.msra.mxu1 %v1779_v26  ;;  %v566_v39 = vld [vmem:[%s3112_s3 + $0x20] sm:$0xff]  ;;  %v1772_v40 = vld [vmem:[%s3112_s3 + $0x128] sm:$0xff]  ;;  %v565_v41 = vld [vmem:[%s3112_s3 + $0x18] sm:$0xff] }
  0x19   : > { %2001 = vmatpush3.msra.mxu0 %v452_v8  ;;  %2031 = vmatprep.subr.mxu1 %v1778_v28  ;;  %v1771_v42 = vld [vmem:[%s3112_s3 + $0x120] sm:$0xff]  ;;  %v564_v43 = vld [vmem:[%s3112_s3 + $0x10] sm:$0xff]  ;;  %v1770_v44 = vld [vmem:[%s3112_s3 + $0x118] sm:$0xff] }
  0x1a   : > { %2002 = vmatprep.subr.mxu0 %v451_v9  ;;  %2032 = vmatpush3.msra.mxu1 %v1778_v28  ;;  %v563_v45 = vld [vmem:[%s3112_s3 + $0x8] sm:$0xff]  ;;  %v1769_v46 = vld [vmem:[%s3112_s3 + $0x110] sm:$0xff]  ;;  %v562_v47 = vld [vmem:[%s3112_s3] sm:$0xff] }
  0x1b   : > { %2003 = vmatpush3.msra.mxu0 %v451_v9  ;;  %2033 = vmatprep.subr.mxu1 %v1777_v30  ;;  %v1768_v48 = vld [vmem:[%s3112_s3 + $0x108] sm:$0xff]  ;;  %v1766_v49 = vld [vmem:[%s3112_s3 + $0xf8] sm:$0xff]  ;;  %v1767_v50 = vld [vmem:[%s3112_s3 + $0x100] sm:$0xff] }
  0x1c   : > { %2004 = vmatprep.subr.mxu0 %v450_v10  ;;  %2034 = vmatpush3.msra.mxu1 %v1777_v30  ;;  %v1800_v51 = vld [vmem:[%s3112_s3 + $0x1f8] sm:$0xff]  ;;  %v1750_v52 = vld [vmem:[%s3111_s2] ss:$0 sm:$0xff]  ;;  %vm1783_vm1 = vmneg %vm553_vm0 }
  0x1d   : > { %2005 = vmatpush3.msra.mxu0 %v450_v10  ;;  %2035 = vmatprep.subr.mxu1 %v1776_v32  ;;  %v1765_v7 = vld [vmem:[%s3112_s3 + $0xf0] sm:$0xff]  ;;  %v1762_v24 = vld [vmem:[%s3112_s3 + $0xd8] sm:$0xff]  ;;  %v1760_v28 = vld [vmem:[%s3112_s3 + $0xc8] sm:$0xff] }
  0x1e   : > { %2006 = vmatprep.subr.mxu0 %v449_v11  ;;  %2036 = vmatpush3.msra.mxu1 %v1776_v32  ;;  %v1761_v26 = vld [vmem:[%s3112_s3 + $0xd0] sm:$0xff]  ;;  %v1759_v30 = vld [vmem:[%s3112_s3 + $0xc0] sm:$0xff]  ;;  %v1758_v32 = vld [vmem:[%s3112_s3 + $0xb8] sm:$0xff] }
  0x1f   : > { %2007 = vmatpush3.msra.mxu0 %v449_v11  ;;  %2037 = vmatprep.subr.mxu1 %v1775_v34 }
  0x20   : > { %2008 = vmatprep.subr.mxu0 %v448_v12  ;;  %2038 = vmatpush3.msra.mxu1 %v1775_v34  ;;  %v1757_v34 = vld [vmem:[%s3112_s3 + $0xb0] sm:$0xff] }
  0x21   : > { %2009 = vmatpush3.msra.mxu0 %v448_v12  ;;  %2039 = vmatprep.subr.mxu1 %v1774_v36 }
  0x22   : > { %2010 = vmatprep.subr.mxu0 %v447_v13  ;;  %2040 = vmatpush3.msra.mxu1 %v1774_v36  ;;  %v1756_v36 = vld [vmem:[%s3112_s3 + $0xa8] sm:$0xff] }
  0x23   : > { %2011 = vmatpush3.msra.mxu0 %v447_v13  ;;  %2041 = vmatprep.subr.mxu1 %v1773_v38 }
  0x24   : > { %2012 = vmatprep.subr.mxu0 %v446_v14  ;;  %2042 = vmatpush3.msra.mxu1 %v1773_v38  ;;  %v1755_v38 = vld [vmem:[%s3112_s3 + $0xa0] sm:$0xff] }
  0x25   : > { %2013 = vmatpush3.msra.mxu0 %v446_v14  ;;  %2043 = vmatprep.subr.mxu1 %v1772_v40  ;;  %v1764_v14 = vld [vmem:[%s3112_s3 + $0xe8] sm:$0xff] }
  0x26   : > { %2014 = vmatprep.subr.mxu0 %v445_v15  ;;  %2044 = vmatpush3.msra.mxu1 %v1772_v40  ;;  %v1754_v40 = vld [vmem:[%s3112_s3 + $0x98] sm:$0xff] }
  0x27   : > { %2015 = vmatpush3.msra.mxu0 %v445_v15  ;;  %2045 = vmatprep.subr.mxu1 %v1771_v42 }
  0x28   : > { %2016 = vmatprep.subr.mxu0 %v444_v16  ;;  %2046 = vmatpush3.msra.mxu1 %v1771_v42  ;;  %v1753_v42 = vld [vmem:[%s3112_s3 + $0x90] sm:$0xff] }
  0x29   : > { %2017 = vmatpush3.msra.mxu0 %v444_v16  ;;  %2047 = vmatprep.subr.mxu1 %v1770_v44 }
  0x2a   : > { %2018 = vmatprep.subr.mxu0 %v443_v17  ;;  %2048 = vmatpush3.msra.mxu1 %v1770_v44  ;;  %v1752_v44 = vld [vmem:[%s3112_s3 + $0x88] sm:$0xff] }
  0x2b   : > { %2019 = vmatpush3.msra.mxu0 %v443_v17  ;;  %2049 = vmatprep.subr.mxu1 %v1769_v46 }
  0x2c   : > { %2021 = vmatmul.mubr.f32.vlgmr.msra.gmra.mxu0 %v442_v18  ;;  %2058 = vmatprep.subr.mxu0 %v577_v19 }
  0x2d   : > { %2059 = vmatpush3.msra.mxu0 %v577_v19  ;;  %2050 = vmatpush3.msra.mxu1 %v1769_v46  ;;  %v1751_v46 = vld [vmem:[%s3112_s3 + $0x80] sm:$0xff] }
  0x2e   : > { %2060 = vmatprep.subr.mxu0 %v576_v20  ;;  %2051 = vmatprep.subr.mxu1 %v1768_v48 }
  0x2f   : > { %2061 = vmatpush3.msra.mxu0 %v576_v20  ;;  %2052 = vmatpush3.msra.mxu1 %v1768_v48  ;;  %v1799_v20 = vld [vmem:[%s3112_s3 + $0x1f0] sm:$0xff] }
  0x30   : > { %2062 = vmatprep.subr.mxu0 %v575_v21  ;;  %2053 = vmatprep.subr.mxu1 %v1767_v50 }
  0x31   : > { %2063 = vmatpush3.msra.mxu0 %v575_v21  ;;  %2054 = vmatpush3.msra.mxu1 %v1767_v50  ;;  %v1763_v21 = vld [vmem:[%s3112_s3 + $0xe0] sm:$0xff] }
  0x32   : > { %2064 = vmatprep.subr.mxu0 %v574_v23  ;;  %2093 = vmatprep.subr.mxu1 %v1800_v51  ;;  %v1785_v50 = vld [vmem:[%s3112_s3 + $0x180] sm:$0xff] }
  0x33   : > { %2065 = vmatpush3.msra.mxu0 %v574_v23  ;;  %v1798_v23 = vld [vmem:[%s3112_s3 + $0x1e8] sm:$0xff] }
  0x34   : > { %2066 = vmatprep.subr.mxu0 %v573_v25 }
  0x35   : > { %2067 = vmatpush3.msra.mxu0 %v573_v25  ;;  %v1797_v25 = vld [vmem:[%s3112_s3 + $0x1e0] sm:$0xff] }
  0x36   : > { %2068 = vmatprep.subr.mxu0 %v572_v27 }
  0x37   : > { %2069 = vmatpush3.msra.mxu0 %v572_v27  ;;  %v1796_v27 = vld [vmem:[%s3112_s3 + $0x1d8] sm:$0xff] }
  0x38   : > { %2070 = vmatprep.subr.mxu0 %v571_v29 }
  0x39   : > { %2071 = vmatpush3.msra.mxu0 %v571_v29  ;;  %v1795_v29 = vld [vmem:[%s3112_s3 + $0x1d0] sm:$0xff] }
  0x3a   : > { %2072 = vmatprep.subr.mxu0 %v570_v31 }
  0x3b   : > { %2073 = vmatpush3.msra.mxu0 %v570_v31  ;;  %v1794_v31 = vld [vmem:[%s3112_s3 + $0x1c8] sm:$0xff] }
  0x3c   : > { %2074 = vmatprep.subr.mxu0 %v569_v33 }
  0x3d   : > { %2075 = vmatpush3.msra.mxu0 %v569_v33  ;;  %v1793_v33 = vld [vmem:[%s3112_s3 + $0x1c0] sm:$0xff] }
  0x3e   : > { %2076 = vmatprep.subr.mxu0 %v568_v35 }
  0x3f   : > { %2077 = vmatpush3.msra.mxu0 %v568_v35  ;;  %v1792_v35 = vld [vmem:[%s3112_s3 + $0x1b8] sm:$0xff] }
  0x40   : > { %2078 = vmatprep.subr.mxu0 %v567_v37 }
  0x41   : > { %2079 = vmatpush3.msra.mxu0 %v567_v37  ;;  %v1791_v37 = vld [vmem:[%s3112_s3 + $0x1b0] sm:$0xff] }
  0x42   : > { %2080 = vmatprep.subr.mxu0 %v566_v39 }
  0x43   : > { %2081 = vmatpush3.msra.mxu0 %v566_v39  ;;  %v1790_v39 = vld [vmem:[%s3112_s3 + $0x1a8] sm:$0xff] }
  0x44   : > { %2082 = vmatprep.subr.mxu0 %v565_v41 }
  0x45   : > { %2083 = vmatpush3.msra.mxu0 %v565_v41  ;;  %v1789_v41 = vld [vmem:[%s3112_s3 + $0x1a0] sm:$0xff] }
  0x46   : > { %2084 = vmatprep.subr.mxu0 %v564_v43 }
  0x47   : > { %2085 = vmatpush3.msra.mxu0 %v564_v43  ;;  %v1788_v43 = vld [vmem:[%s3112_s3 + $0x198] sm:$0xff] }
  0x48   : > { %2086 = vmatprep.subr.mxu0 %v563_v45 }
  0x49   : > { %2087 = vmatpush3.msra.mxu0 %v563_v45  ;;  %v1787_v45 = vld [vmem:[%s3112_s3 + $0x190] sm:$0xff] }
  0x4a   : > { %2088 = vmatprep.subr.mxu0 %v562_v47 }
  0x4b   : > { %2089 = vmatpush3.msra.mxu0 %v562_v47  ;;  %v1786_v47 = vld [vmem:[%s3112_s3 + $0x188] sm:$0xff] }
  0x4c   : > { %2128 = vmatprep.subr.mxu0 %v1766_v49 }
  0xec   : > { %v2022_v53 = vpop.f32.mrf.mxu0 }
  0xed   : > { %v538_v54 = vadd.f32 %v2022_v53, %v1750_v52 }
  0xee   : > { %v532_v55 = vpop.f32.mrf.mxu0 }
  0xef   : > { %v544_v56 = vmul.f32 0.70710677, %v538_v54  ;;  %v533_v57 = vadd.f32 %v1750_v52, %v532_v55  ;;  %v542_v60 = vmul.f32 0.5, %v538_v54  ;;  %v1816_v54 = vld [vmem:[%s3112_s3 + $0x278] sm:$0xff] }
  0xf1   : > { %2311 = verf.f32 %v544_v56  ;;  %v543_v58 = vmul.f32 0.70710677, %v533_v57  ;;  %v541_v0 = vmul.f32 0.5, %v533_v57  ;;  %v1815_v56 = vld [vmem:[%s3112_s3 + $0x270] sm:$0xff] }
  0xf3   : > { %2313 = verf.f32 %v543_v58  ;;  %v1814_v58 = vld [vmem:[%s3112_s3 + $0x268] sm:$0xff] }
  0xfe   : > { %v2312_v59 = vpop.eup %2311 }
  0xff   : > { %v548_v61 = vadd.f32 1.0, %v2312_v59  ;;  %v1813_v59 = vld [vmem:[%s3112_s3 + $0x260] sm:$0xff] }
 0x100   : > { %v2314_v62 = vpop.eup %2313 }
 0x101   : > { %v2568_v63 = vmul.f32 %v548_v61, %v542_v60  ;;  %v547_v1 = vadd.f32 1.0, %v2314_v62  ;;  %v1812_v60 = vld [vmem:[%s3112_s3 + $0x258] sm:$0xff]  ;;  %v1811_v61 = vld [vmem:[%s3112_s3 + $0x250] sm:$0xff]  ;;  %v1810_v62 = vld [vmem:[%s3112_s3 + $0x248] sm:$0xff] }
 0x103   : > { %v555_v2 = vrot.slane %v2568_v63, 6  ;;  %v2571_v3 = vmul.f32 %v547_v1, %v541_v0  ;;  %v1809_v0 = vld [vmem:[%s3112_s3 + $0x240] sm:$0xff]  ;;  %v1808_v1 = vld [vmem:[%s3112_s3 + $0x238] sm:$0xff] }
 0x105   : > { %v554_v4 = vrot.slane %v2571_v3, 6  ;;  %v2574_v5 = vsel %vm553_vm0, %v555_v2, 0.0 }
 0x106   : > { %v618_v9 = vrot.slane %v2574_v5, 2  ;;  %v876_v48 = vrot.slane %v2574_v5, 1  ;;  %v793_v53 = vrot.slane %v2574_v5, 3 }
 0x107   : > { %2090 = vmatprep.mubr.msk.f32.mxu0 %vm1783_vm1, %v554_v4  ;;  %v2576_v6 = vsel %vm553_vm0, %v554_v4, %v555_v2  ;;  %v2581_v8 = vsel %vm553_vm0, 0.0, %v554_v4  ;;  %v1807_v2 = vld [vmem:[%s3112_s3 + $0x230] sm:$0xff]  ;;  %v1806_v4 = vld [vmem:[%s3112_s3 + $0x228] sm:$0xff] }
 0x108   : > { %2091 = vmatmul.mubr.f32.vlgmr.msra.gmra.mxu0 %v2576_v6  ;;  %v615_v10 = vrot.slane %v2581_v8, 2  ;;  %v616_v11 = vrot.slane %v2576_v6, 2  ;;  %v873_v12 = vrot.slane %v2581_v8, 1  ;;  %v874_v13 = vrot.slane %v2576_v6, 1 }
 0x109   : > { %2129 = vmatpush3.msra.mxu0 %v1766_v49  ;;  %v790_v15 = vrot.slane %v2581_v8, 3  ;;  %v791_v16 = vrot.slane %v2576_v6, 3  ;;  %v974_v52 = vrot.slane %v2576_v6, 4  ;;  %v1805_v6 = vld [vmem:[%s3112_s3 + $0x220] sm:$0xff] }
 0x10a   : > { %2130 = vmatprep.subr.mxu0 %v1765_v7  ;;  %v617_v17 = vsel %vm614_vm2, %v615_v10, %v616_v11  ;;  %v875_v18 = vsel %vm872_vm3, %v873_v12, %v874_v13  ;;  %v619_v19 = vsel %vm614_vm2, %v616_v11, %v618_v9  ;;  %v877_v49 = vsel %vm872_vm3, %v874_v13, %v876_v48  ;;  %v1802_v9 = vld [vmem:[%s3112_s3 + $0x208] sm:$0xff]  ;;  %v1801_v10 = vld [vmem:[%s3112_s3 + $0x200] sm:$0xff]  ;;  %v1083_v13 = vld [vmem:[%s3114_s5 + $0x78] sm:$0xff] }
 0x10b   : > { %2131 = vmatpush3.msra.mxu0 %v1765_v7  ;;  %2055 = vmatprep.mubr.f32.mxu1 %v617_v17  ;;  %v792_v22 = vsel %vm789_vm4, %v790_v15, %v791_v16  ;;  %v794_v55 = vsel %vm789_vm4, %v791_v16, %v793_v53  ;;  %v1804_v7 = vld [vmem:[%s3112_s3 + $0x218] sm:$0xff]  ;;  %v976_v11 = vrot.slane %v2574_v5, 4  ;;  %v1081_v15 = vld [vmem:[%s3114_s5 + $0x68] sm:$0xff]  ;;  %v1080_v5 = vld [vmem:[%s3114_s5 + $0x60] sm:$0xff] }
 0x10c   : > { %2132 = vmatprep.subr.mxu0 %v1764_v14  ;;  %2160 = vmatprep.mubr.f32.mxu0 %v875_v18  ;;  %v1079_v16 = vld [vmem:[%s3114_s5 + $0x58] sm:$0xff]  ;;  %v1078_v17 = vld [vmem:[%s3114_s5 + $0x50] sm:$0xff]  ;;  %v1077_v18 = vld [vmem:[%s3114_s5 + $0x48] sm:$0xff] }
 0x10d   : > { %2056 = vmatmul.mubr.f32.vlgmr.msra.gmra.mxu1 %v619_v19  ;;  %2133 = vmatpush3.msra.mxu0 %v1764_v14  ;;  %v977_v12 = vsel %vm972_vm5, %v974_v52, %v976_v11  ;;  %v1082_v14 = vld [vmem:[%s3114_s5 + $0x70] sm:$0xff]  ;;  %v1076_v19 = vld [vmem:[%s3114_s5 + $0x40] sm:$0xff]  ;;  %v1495_v53 = vld [vmem:[%s3118_s9 + $0x58] sm:$0xff] }
 0x10e   : > { %2094 = vmatpush3.msra.mxu1 %v1800_v51  ;;  %2125 = vmatprep.mubr.f32.mxu1 %v792_v22  ;;  %v973_v51 = vrot.slane %v2581_v8, 4  ;;  %v1803_v8 = vld [vmem:[%s3112_s3 + $0x210] sm:$0xff]  ;;  %v1073_v22 = vld [vmem:[%s3114_s5 + $0x28] sm:$0xff]  ;;  %v1592_v11 = vld [vmem:[%s3120_s11 + $0x40] sm:$0xff] }
 0x10f   : > { %2095 = vmatprep.subr.mxu1 %v1799_v20  ;;  %2134 = vmatprep.subr.mxu0 %v1763_v21 }
 0x110   : > { %2096 = vmatpush3.msra.mxu1 %v1799_v20  ;;  %2135 = vmatpush3.msra.mxu0 %v1763_v21  ;;  %v975_v57 = vsel %vm972_vm5, %v973_v51, %v974_v52  ;;  %v1075_v20 = vld [vmem:[%s3114_s5 + $0x38] sm:$0xff]  ;;  %v1074_v21 = vld [vmem:[%s3114_s5 + $0x30] sm:$0xff]  ;;  %v1497_v51 = vld [vmem:[%s3118_s9 + $0x68] sm:$0xff] }
 0x111   : > { %2097 = vmatprep.subr.mxu1 %v1798_v23  ;;  %2136 = vmatprep.subr.mxu0 %v1762_v24  ;;  %v1496_v52 = vld [vmem:[%s3118_s9 + $0x60] sm:$0xff] }
 0x112   : > { %2098 = vmatpush3.msra.mxu1 %v1798_v23  ;;  %2137 = vmatpush3.msra.mxu0 %v1762_v24  ;;  %v1072_v23 = vld [vmem:[%s3114_s5 + $0x20] sm:$0xff]  ;;  %v1071_v24 = vld [vmem:[%s3114_s5 + $0x18] sm:$0xff] }
 0x113   : > { %2099 = vmatprep.subr.mxu1 %v1797_v25  ;;  %2138 = vmatprep.subr.mxu0 %v1761_v26 }
 0x114   : > { %2100 = vmatpush3.msra.mxu1 %v1797_v25  ;;  %2139 = vmatpush3.msra.mxu0 %v1761_v26  ;;  %v1070_v25 = vld [vmem:[%s3114_s5 + $0x10] sm:$0xff]  ;;  %v1069_v26 = vld [vmem:[%s3114_s5 + $0x8] sm:$0xff] }
 0x115   : > { %2101 = vmatprep.subr.mxu1 %v1796_v27  ;;  %2140 = vmatprep.subr.mxu0 %v1760_v28 }
 0x116   : > { %2102 = vmatpush3.msra.mxu1 %v1796_v27  ;;  %2141 = vmatpush3.msra.mxu0 %v1760_v28  ;;  %v1068_v27 = vld [vmem:[%s3114_s5] sm:$0xff] }
 0x117   : > { %2103 = vmatprep.subr.mxu1 %v1795_v29  ;;  %2142 = vmatprep.subr.mxu0 %v1759_v30 }
 0x118   : > { %2104 = vmatpush3.msra.mxu1 %v1795_v29  ;;  %2143 = vmatpush3.msra.mxu0 %v1759_v30 }
 0x119   : > { %2105 = vmatprep.subr.mxu1 %v1794_v31  ;;  %2144 = vmatprep.subr.mxu0 %v1758_v32 }
 0x11a   : > { %2106 = vmatpush3.msra.mxu1 %v1794_v31  ;;  %2145 = vmatpush3.msra.mxu0 %v1758_v32 }
 0x11b   : > { %2107 = vmatprep.subr.mxu1 %v1793_v33  ;;  %2146 = vmatprep.subr.mxu0 %v1757_v34 }
 0x11c   : > { %2108 = vmatpush3.msra.mxu1 %v1793_v33  ;;  %2147 = vmatpush3.msra.mxu0 %v1757_v34 }
 0x11d   : > { %2109 = vmatprep.subr.mxu1 %v1792_v35  ;;  %2148 = vmatprep.subr.mxu0 %v1756_v36 }
 0x11e   : > { %2110 = vmatpush3.msra.mxu1 %v1792_v35  ;;  %2149 = vmatpush3.msra.mxu0 %v1756_v36 }
 0x11f   : > { %2111 = vmatprep.subr.mxu1 %v1791_v37  ;;  %2150 = vmatprep.subr.mxu0 %v1755_v38 }
 0x120   : > { %2112 = vmatpush3.msra.mxu1 %v1791_v37  ;;  %2151 = vmatpush3.msra.mxu0 %v1755_v38 }
 0x121   : > { %2113 = vmatprep.subr.mxu1 %v1790_v39  ;;  %2152 = vmatprep.subr.mxu0 %v1754_v40 }
 0x122   : > { %2114 = vmatpush3.msra.mxu1 %v1790_v39  ;;  %2153 = vmatpush3.msra.mxu0 %v1754_v40 }
 0x123   : > { %2115 = vmatprep.subr.mxu1 %v1789_v41  ;;  %2154 = vmatprep.subr.mxu0 %v1753_v42 }
 0x124   : > { %2116 = vmatpush3.msra.mxu1 %v1789_v41  ;;  %2155 = vmatpush3.msra.mxu0 %v1753_v42 }
 0x125   : > { %2117 = vmatprep.subr.mxu1 %v1788_v43  ;;  %2156 = vmatprep.subr.mxu0 %v1752_v44 }
 0x126   : > { %2118 = vmatpush3.msra.mxu1 %v1788_v43  ;;  %2157 = vmatpush3.msra.mxu0 %v1752_v44 }
 0x127   : > { %2119 = vmatprep.subr.mxu1 %v1787_v45  ;;  %2158 = vmatprep.subr.mxu0 %v1751_v46 }
 0x128   : > { %2120 = vmatpush3.msra.mxu1 %v1787_v45  ;;  %2159 = vmatpush3.msra.mxu0 %v1751_v46  ;;  %v1817_v45 = vld [vmem:[%s3113_s4] ss:$0 sm:$0xff] }
 0x129   : > { %2121 = vmatprep.subr.mxu1 %v1786_v47  ;;  %2161 = vmatmul.mubr.f32.vlgmr.msra.gmra.mxu0 %v877_v49  ;;  %v1499_v49 = vld [vmem:[%s3118_s9 + $0x78] sm:$0xff] }
 0x12a   : > { %2122 = vmatpush3.msra.mxu1 %v1786_v47  ;;  %2198 = vmatprep.subr.mxu0 %v1083_v13 }
 0x12b   : > { %2123 = vmatprep.subr.mxu1 %v1785_v50  ;;  %2199 = vmatpush3.msra.mxu0 %v1083_v13  ;;  %v1590_v13 = vld [vmem:[%s3120_s11 + $0x30] sm:$0xff] }
 0x12c   : > { %2124 = vmatpush3.msra.mxu1 %v1785_v50  ;;  %2200 = vmatprep.subr.mxu0 %v1082_v14  ;;  %v1498_v50 = vld [vmem:[%s3118_s9 + $0x70] sm:$0xff] }
 0x12d   : > { %2126 = vmatmul.mubr.f32.vlgmr.msra.gmra.mxu1 %v794_v55  ;;  %2163 = vmatprep.subr.mxu1 %v1816_v54  ;;  %v1493_v55 = vld [vmem:[%s3118_s9 + $0x48] sm:$0xff] }
 0x12e   : > { %2164 = vmatpush3.msra.mxu1 %v1816_v54  ;;  %2195 = vmatprep.mubr.f32.mxu1 %v975_v57  ;;  %v1494_v54 = vld [vmem:[%s3118_s9 + $0x50] sm:$0xff]  ;;  %v1491_v57 = vld [vmem:[%s3118_s9 + $0x38] sm:$0xff] }
 0x12f   : > { %2165 = vmatprep.subr.mxu1 %v1815_v56  ;;  %2201 = vmatpush3.msra.mxu0 %v1082_v14  ;;  %v1589_v14 = vld [vmem:[%s3120_s11 + $0x28] sm:$0xff] }
 0x130   : > { %2166 = vmatpush3.msra.mxu1 %v1815_v56  ;;  %2202 = vmatprep.subr.mxu0 %v1081_v15  ;;  %v1492_v56 = vld [vmem:[%s3118_s9 + $0x40] sm:$0xff] }
 0x131   : > { %2167 = vmatprep.subr.mxu1 %v1814_v58  ;;  %2203 = vmatpush3.msra.mxu0 %v1081_v15  ;;  %v1588_v15 = vld [vmem:[%s3120_s11 + $0x20] sm:$0xff] }
 0x132   : > { %2168 = vmatpush3.msra.mxu1 %v1814_v58  ;;  %2204 = vmatprep.subr.mxu0 %v1080_v5  ;;  %v1490_v58 = vld [vmem:[%s3118_s9 + $0x30] sm:$0xff] }
 0x133   : > { %2169 = vmatprep.subr.mxu1 %v1813_v59  ;;  %2205 = vmatpush3.msra.mxu0 %v1080_v5  ;;  %v1180_v5 = vlaneseq }
 0x134   : > { %2170 = vmatpush3.msra.mxu1 %v1813_v59  ;;  %2206 = vmatprep.subr.mxu0 %v1079_v16  ;;  %v1489_v59 = vld [vmem:[%s3118_s9 + $0x28] sm:$0xff] }
 0x135   : > { %2171 = vmatprep.subr.mxu1 %v1812_v60  ;;  %2207 = vmatpush3.msra.mxu0 %v1079_v16  ;;  %v1181_v16 = vshrl.u32 %v1180_v5, 7 }
 0x136   : > { %2172 = vmatpush3.msra.mxu1 %v1812_v60  ;;  %2208 = vmatprep.subr.mxu0 %v1078_v17  ;;  %v1488_v60 = vld [vmem:[%s3118_s9 + $0x20] sm:$0xff] }
 0x137   : > { %2173 = vmatprep.subr.mxu1 %v1811_v61  ;;  %2209 = vmatpush3.msra.mxu0 %v1078_v17  ;;  %v1177_v17 = vld [vmem:[%s3116_s7] sm:$0xff] }
 0x138   : > { %2174 = vmatpush3.msra.mxu1 %v1811_v61  ;;  %2210 = vmatprep.subr.mxu0 %v1077_v18  ;;  %v1487_v61 = vld [vmem:[%s3118_s9 + $0x18] sm:$0xff] }
 0x139   : > { %2175 = vmatprep.subr.mxu1 %v1810_v62  ;;  %2211 = vmatpush3.msra.mxu0 %v1077_v18  ;;  %v1209_v18 = vsub.s32 4, %v1181_v16 }
 0x13a   : > { %2176 = vmatpush3.msra.mxu1 %v1810_v62  ;;  %2212 = vmatprep.subr.mxu0 %v1076_v19  ;;  %v1486_v62 = vld [vmem:[%s3118_s9 + $0x10] sm:$0xff] }
 0x13b   : > { %2177 = vmatprep.subr.mxu1 %v1809_v0  ;;  %2213 = vmatpush3.msra.mxu0 %v1076_v19  ;;  %v1228_v19 = vsub.s32 5, %v1181_v16 }
 0x13c   : > { %2178 = vmatpush3.msra.mxu1 %v1809_v0  ;;  %2214 = vmatprep.subr.mxu0 %v1075_v20  ;;  %v1485_v0 = vld [vmem:[%s3118_s9 + $0x8] sm:$0xff] }
 0x13d   : > { %2179 = vmatprep.subr.mxu1 %v1808_v1  ;;  %2215 = vmatpush3.msra.mxu0 %v1075_v20  ;;  %v1210_v20 = vrot.slane %v1177_v17, %v1209_v18 }
 0x13e   : > { %2180 = vmatpush3.msra.mxu1 %v1808_v1  ;;  %2216 = vmatprep.subr.mxu0 %v1074_v21  ;;  %v1484_v1 = vld [vmem:[%s3118_s9] sm:$0xff] }
 0x13f   : > { %2181 = vmatprep.subr.mxu1 %v1807_v2  ;;  %2217 = vmatpush3.msra.mxu0 %v1074_v21  ;;  %v2885_v21 = vrot.slane %v1177_v17, %v1228_v19 }
 0x140   : > { %2182 = vmatpush3.msra.mxu1 %v1807_v2  ;;  %2218 = vmatprep.subr.mxu0 %v1073_v22  ;;  %v1599_v2 = vld [vmem:[%s3120_s11 + $0x78] sm:$0xff] }
 0x141   : > { %2183 = vmatprep.subr.mxu1 %v1806_v4  ;;  %2219 = vmatpush3.msra.mxu0 %v1073_v22  ;;  %v1182_v22 = vsub.s32 0, %v1181_v16 }
 0x142   : > { %2184 = vmatpush3.msra.mxu1 %v1806_v4  ;;  %2220 = vmatprep.subr.mxu0 %v1072_v23  ;;  %v1598_v4 = vld [vmem:[%s3120_s11 + $0x70] sm:$0xff] }
 0x143   : > { %2185 = vmatprep.subr.mxu1 %v1805_v6  ;;  %2221 = vmatpush3.msra.mxu0 %v1072_v23  ;;  %v1249_v23 = vsub.s32 6, %v1181_v16 }
 0x144   : > { %2186 = vmatpush3.msra.mxu1 %v1805_v6  ;;  %2222 = vmatprep.subr.mxu0 %v1071_v24  ;;  %v1597_v6 = vld [vmem:[%s3120_s11 + $0x68] sm:$0xff] }
 0x145   : > { %2187 = vmatprep.subr.mxu1 %v1804_v7  ;;  %2223 = vmatpush3.msra.mxu0 %v1071_v24  ;;  %v1270_v24 = vsub.s32 7, %v1181_v16 }
 0x146   : > { %2188 = vmatpush3.msra.mxu1 %v1804_v7  ;;  %2224 = vmatprep.subr.mxu0 %v1070_v25  ;;  %v1596_v7 = vld [vmem:[%s3120_s11 + $0x60] sm:$0xff] }
 0x147   : > { %2189 = vmatprep.subr.mxu1 %v1803_v8  ;;  %2225 = vmatpush3.msra.mxu0 %v1070_v25  ;;  %v1188_v25 = vsub.s32 1, %v1181_v16 }
 0x148   : > { %2190 = vmatpush3.msra.mxu1 %v1803_v8  ;;  %2226 = vmatprep.subr.mxu0 %v1069_v26  ;;  %v1595_v8 = vld [vmem:[%s3120_s11 + $0x58] sm:$0xff] }
 0x149   : > { %2191 = vmatprep.subr.mxu1 %v1802_v9  ;;  %2227 = vmatpush3.msra.mxu0 %v1069_v26  ;;  %v1195_v26 = vsub.s32 2, %v1181_v16 }
 0x14a   : > { %2192 = vmatpush3.msra.mxu1 %v1802_v9  ;;  %2228 = vmatprep.subr.mxu0 %v1068_v27  ;;  %v1594_v9 = vld [vmem:[%s3120_s11 + $0x50] sm:$0xff] }
 0x14b   : > { %2193 = vmatprep.subr.mxu1 %v1801_v10  ;;  %2229 = vmatpush3.msra.mxu0 %v1068_v27  ;;  %v1202_v27 = vsub.s32 3, %v1181_v16 }
 0x14c   : > { %2194 = vmatpush3.msra.mxu1 %v1801_v10  ;;  %2268 = vmatprep.subr.mxu0 %v1599_v2  ;;  %v1593_v10 = vld [vmem:[%s3120_s11 + $0x48] sm:$0xff] }
 0x14d   : > { %2196 = vmatmul.mubr.f32.vlgmr.msra.gmra.mxu1 %v977_v12  ;;  %2233 = vmatprep.subr.mxu1 %v1499_v49  ;;  %v1591_v12 = vld [vmem:[%s3120_s11 + $0x38] sm:$0xff] }
 0x14e   : > { %2234 = vmatpush3.msra.mxu1 %v1499_v49 }
 0x14f   : > { %2235 = vmatprep.subr.mxu1 %v1498_v50 }
 0x150   : > { %2236 = vmatpush3.msra.mxu1 %v1498_v50 }
 0x151   : > { %2237 = vmatprep.subr.mxu1 %v1497_v51 }
 0x152   : > { %2238 = vmatpush3.msra.mxu1 %v1497_v51 }
 0x153   : > { %2239 = vmatprep.subr.mxu1 %v1496_v52 }
 0x154   : > { %2240 = vmatpush3.msra.mxu1 %v1496_v52 }
 0x155   : > { %2241 = vmatprep.subr.mxu1 %v1495_v53 }
 0x156   : > { %2242 = vmatpush3.msra.mxu1 %v1495_v53 }
 0x157   : > { %2243 = vmatprep.subr.mxu1 %v1494_v54 }
 0x158   : > { %2244 = vmatpush3.msra.mxu1 %v1494_v54 }
 0x159   : > { %2245 = vmatprep.subr.mxu1 %v1493_v55 }
 0x15a   : > { %2246 = vmatpush3.msra.mxu1 %v1493_v55 }
 0x15b   : > { %2247 = vmatprep.subr.mxu1 %v1492_v56 }
 0x15c   : > { %2248 = vmatpush3.msra.mxu1 %v1492_v56 }
 0x15d   : > { %2249 = vmatprep.subr.mxu1 %v1491_v57 }
 0x15e   : > { %2250 = vmatpush3.msra.mxu1 %v1491_v57 }
 0x15f   : > { %2251 = vmatprep.subr.mxu1 %v1490_v58 }
 0x160   : > { %2252 = vmatpush3.msra.mxu1 %v1490_v58 }
 0x161   : > { %2253 = vmatprep.subr.mxu1 %v1489_v59 }
 0x162   : > { %2254 = vmatpush3.msra.mxu1 %v1489_v59 }
 0x163   : > { %2255 = vmatprep.subr.mxu1 %v1488_v60 }
 0x164   : > { %2256 = vmatpush3.msra.mxu1 %v1488_v60 }
 0x165   : > { %2257 = vmatprep.subr.mxu1 %v1487_v61 }
 0x166   : > { %2258 = vmatpush3.msra.mxu1 %v1487_v61 }
 0x167   : > { %2259 = vmatprep.subr.mxu1 %v1486_v62 }
 0x168   : > { %2260 = vmatpush3.msra.mxu1 %v1486_v62 }
 0x169   : > { %2261 = vmatprep.subr.mxu1 %v1485_v0 }
 0x16a   : > { %2262 = vmatpush3.msra.mxu1 %v1485_v0 }
 0x16b   : > { %2263 = vmatprep.subr.mxu1 %v1484_v1 }
 0x16c   : > { %2264 = vmatpush3.msra.mxu1 %v1484_v1 }
 0x1c8   : > { %v2092_v29 = vpop.f32.mrf.mxu0 }
 0x1ca   : > { %v763_v32 = vpop.f32.mrf.mxu0 }
 0x1cd   : > { %v2057_v28 = vpop.f32.mrf.mxu1 }
 0x1ce   : > { %v769_v35 = vadd.f32 %v2092_v29, %v2057_v28  ;;  %v1183_v28 = vrot.slane %v1177_v17, %v1182_v22  ;;  %v2887_v29 = vmul.f32 0.0, %v1210_v20 }
 0x1cf   : > { %v688_v30 = vpop.f32.mrf.mxu1 }
 0x1d0   : > { %v764_v37 = vadd.f32 %v763_v32, %v688_v30  ;;  %v1250_v30 = vrot.slane %v1177_v17, %v1249_v23  ;;  %v1818_v32 = vld [vmem:[%s3115_s6] ss:$0 sm:$0xff] }
 0x1e9   : > { %v2162_v33 = vpop.f32.mrf.mxu0 }
 0x1eb   : > { %v946_v39 = vpop.f32.mrf.mxu0 }
 0x1ed   : > { %v2127_v31 = vpop.f32.mrf.mxu1 }
 0x1ee   : > { %v952_v40 = vadd.f32 %v2162_v33, %v2127_v31  ;;  %v1271_v31 = vrot.slane %v1177_v17, %v1270_v24  ;;  %v1189_v33 = vrot.slane %v1177_v17, %v1188_v25 }
 0x1ef   : > { %v863_v34 = vpop.f32.mrf.mxu1 }
 0x1f0   : > { %v947_v42 = vadd.f32 %v946_v39, %v863_v34  ;;  %v2892_v34 = vrot.slane %v1177_v17, %v1195_v26  ;;  %v2902_v39 = vmul.f32 0.0, %v1183_v28 }
 0x20d   : > { %v2197_v36 = vpop.f32.mrf.mxu1 }
 0x20e   : > { %v1056_v38 = vadd.f32 %v2197_v36, %v769_v35  ;;  %v2894_v35 = vrot.slane %v1177_v17, %v1202_v27  ;;  %v2897_v36 = vmul.f32 0.0, %v2885_v21 }
 0x20f   : > { %v1046_v41 = vpop.f32.mrf.mxu1 }
 0x210   : > { %v1055_v43 = vadd.f32 %v1046_v41, %v764_v37  ;;  %v1058_v44 = vadd.f32 %v1056_v38, %v952_v40  ;;  %v1178_v37 = vld [vmem:[%s3116_s7 + $0x8] sm:$0xff]  ;;  %v2904_v40 = vmul.f32 0.0, %v1189_v33  ;;  %v2907_v41 = vmul.f32 0.0, %v2892_v34 }
 0x211   : > { %v1236_v49 = vrot.slane %v2897_v36, 4  ;;  %v2919_v50 = vrot.slane %v1178_v37, %v1182_v22  ;;  %v2921_v51 = vrot.slane %v1178_v37, %v1188_v25  ;;  %v2923_v52 = vrot.slane %v1178_v37, %v1195_v26 }
 0x212   : > { %v1057_v46 = vadd.f32 %v1055_v43, %v947_v42  ;;  %v1067_v48 = vadd.f32 %v1817_v45, %v1058_v44  ;;  %v2910_v42 = vmul.f32 0.0, %v2894_v35  ;;  %v1179_v44 = vld [vmem:[%s3116_s7 + $0x10] sm:$0x7]  ;;  %v2925_v55 = vrot.slane %v1178_v37, %v1202_v27 }
 0x213   : > { %v2927_v56 = vrot.slane %v1178_v37, %v1209_v18  ;;  %v2929_v57 = vrot.slane %v1178_v37, %v1228_v19  ;;  %v2931_v58 = vrot.slane %v1178_v37, %v1249_v23  ;;  %v2933_v59 = vrot.slane %v1179_v44, %v1188_v25 }
 0x214   : > { %v1066_v47 = vadd.f32 %v1817_v45, %v1057_v46  ;;  %v1217_v45 = vrot.slane %v2887_v29, 4  ;;  %v1251_v46 = vmul.f32 0.0, %v1250_v30  ;;  %v2935_v60 = vrot.slane %v1179_v44, %v1195_v26 }
 0x216   : > { %2230 = vmatprep.mubr.f32.mxu0 %v1066_v47  ;;  %v2916_v47 = vmul.f32 0.0, %v1271_v31  ;;  %v1257_v0 = vrot.slane %v1251_v46, 4 }
 0x217   : > { %2231 = vmatmul.mubr.f32.vlgmr.msra.gmra.mxu0 %v1067_v48 }
 0x218   : > { %2269 = vmatpush3.msra.mxu0 %v1599_v2  ;;  %v1278_v1 = vrot.slane %v2916_v47, 4  ;;  %v2941_v2 = vrot.slane %v1178_v37, %v1270_v24 }
 0x219   : > { %2270 = vmatprep.subr.mxu0 %v1598_v4 }
 0x21a   : > { %2271 = vmatpush3.msra.mxu0 %v1598_v4  ;;  %v2943_v4 = vrot.slane %v1179_v44, %v1182_v22 }
 0x21b   : > { %2272 = vmatprep.subr.mxu0 %v1597_v6 }
 0x21c   : > { %2273 = vmatpush3.msra.mxu0 %v1597_v6  ;;  %v2946_v6 = vmul.f32 0.0, %v2933_v59 }
 0x21d   : > { %2274 = vmatprep.subr.mxu0 %v1596_v7 }
 0x21e   : > { %2275 = vmatpush3.msra.mxu0 %v1596_v7  ;;  %v2949_v7 = vmul.f32 0.0, %v2935_v60 }
 0x21f   : > { %2276 = vmatprep.subr.mxu0 %v1595_v8 }
 0x220   : > { %2277 = vmatpush3.msra.mxu0 %v1595_v8 }
 0x221   : > { %2278 = vmatprep.subr.mxu0 %v1594_v9 }
 0x222   : > { %2279 = vmatpush3.msra.mxu0 %v1594_v9 }
 0x223   : > { %2280 = vmatprep.subr.mxu0 %v1593_v10 }
 0x224   : > { %2281 = vmatpush3.msra.mxu0 %v1593_v10 }
 0x225   : > { %2282 = vmatprep.subr.mxu0 %v1592_v11 }
 0x226   : > { %2283 = vmatpush3.msra.mxu0 %v1592_v11 }
 0x227   : > { %2284 = vmatprep.subr.mxu0 %v1591_v12 }
 0x228   : > { %2285 = vmatpush3.msra.mxu0 %v1591_v12 }
 0x229   : > { %2286 = vmatprep.subr.mxu0 %v1590_v13 }
 0x22a   : > { %2287 = vmatpush3.msra.mxu0 %v1590_v13 }
 0x22b   : > { %2288 = vmatprep.subr.mxu0 %v1589_v14 }
 0x22c   : > { %2289 = vmatpush3.msra.mxu0 %v1589_v14 }
 0x22d   : > { %2290 = vmatprep.subr.mxu0 %v1588_v15 }
 0x22e   : > { %2291 = vmatpush3.msra.mxu0 %v1588_v15 }
 0x2d7   : > { %v2232_v38 = vpop.f32.mrf.mxu0 }
 0x2d8   : > { %v1163_v43 = vadd.f32 %v2232_v38, %v1818_v32 }
 0x2d9   : > { %v1157_v48 = vpop.f32.mrf.mxu0 }
 0x2da   : > { %v1170_v53 = vrot.slane %v1163_v43, 7  ;;  %v1158_v54 = vadd.f32 %v1818_v32, %v1157_v48 }
 0x2dc   : > { %v2938_v61 = vsel %vm1168_vm6, %v1170_v53, 0.0  ;;  %v1169_v62 = vrot.slane %v1158_v54, 7 }
 0x2dd   : > { %v1303_v10 = vmul.f32 %v2921_v51, %v2938_v61  ;;  %v1313_v11 = vmul.f32 %v2923_v52, %v2938_v61  ;;  %v2963_v12 = vmul.f32 %v2925_v55, %v2938_v61  ;;  %v2967_v13 = vmul.f32 %v2927_v56, %v2938_v61 }
 0x2de   : > { %v2952_v8 = vsel %vm1168_vm6, %v1169_v62, %v1170_v53  ;;  %v2955_v9 = vsel %vm1168_vm6, 0.0, %v1169_v62  ;;  %v2971_v14 = vmul.f32 %v2929_v57, %v2938_v61  ;;  %v2975_v15 = vmul.f32 %v2931_v58, %v2938_v61 }
 0x2df   : > { %v1185_v5 = vmul.f32 %v1183_v28, %v2955_v9  ;;  %v1191_v16 = vmul.f32 %v1189_v33, %v2955_v9  ;;  %v1192_v17 = vmul.f32 %v1189_v33, %v2952_v8  ;;  %v1212_v18 = vmul.f32 %v1210_v20, %v2955_v9 }
 0x2e0   : > { %v1213_v19 = vmul.f32 %v1210_v20, %v2952_v8  ;;  %v1231_v22 = vmul.f32 %v2885_v21, %v2955_v9  ;;  %v1232_v23 = vmul.f32 %v2885_v21, %v2952_v8  ;;  %v1252_v24 = vmul.f32 %v1250_v30, %v2955_v9 }
 0x2e1   : > { %v1218_v25 = vrot.slane %v1212_v18, 4  ;;  %v1253_v26 = vmul.f32 %v1250_v30, %v2952_v8  ;;  %v1273_v27 = vmul.f32 %v1271_v31, %v2955_v9  ;;  %v1274_v28 = vmul.f32 %v1271_v31, %v2952_v8 }
 0x2e2   : > { %v1220_v29 = vrot.slane %v1213_v19, 4  ;;  %v1237_v32 = vrot.slane %v1231_v22, 4  ;;  %v1239_v33 = vrot.slane %v1232_v23, 4  ;;  %v1258_v36 = vrot.slane %v1252_v24, 4 }
 0x2e3   : > { %v1219_v20 = vsel %vm972_vm5, %v1217_v45, %v1218_v25  ;;  %v1260_v37 = vrot.slane %v1253_v26, 4  ;;  %v1279_v38 = vrot.slane %v1273_v27, 4  ;;  %v1281_v43 = vrot.slane %v1274_v28, 4 }
 0x2e4   : > { %v1198_v21 = vmul.f32 %v2892_v34, %v2955_v9  ;;  %v1199_v44 = vmul.f32 %v2892_v34, %v2952_v8  ;;  %v1221_v30 = vsel %vm972_vm5, %v1218_v25, %v1220_v29  ;;  %v1238_v46 = vsel %vm972_vm5, %v1236_v49, %v1237_v32 }
 0x2e5   : > { %v1205_v31 = vmul.f32 %v2894_v35, %v2955_v9  ;;  %v1206_v47 = vmul.f32 %v2894_v35, %v2952_v8  ;;  %v1224_v45 = vadd.f32 %v1219_v20, %v2902_v39  ;;  %v1240_v48 = vsel %vm972_vm5, %v1237_v32, %v1239_v33 }
 0x2e6   : > { %v1246_v53 = vadd.f32 %v1239_v33, %v1192_v17  ;;  %v1259_v54 = vsel %vm972_vm5, %v1257_v0, %v1258_v36  ;;  %v1261_v62 = vsel %vm972_vm5, %v1258_v36, %v1260_v37  ;;  %v1280_v34 = vsel %vm972_vm5, %v1278_v1, %v1279_v38 }
 0x2e7   : > { %v1225_v18 = vadd.f32 %v1221_v30, %v1185_v5  ;;  %v1244_v49 = vadd.f32 %v1238_v46, %v2904_v40  ;;  %v1267_v19 = vadd.f32 %v1260_v37, %v1199_v44  ;;  %v1282_v22 = vsel %vm972_vm5, %v1279_v38, %v1281_v43 }
 0x2e8   : > { %v1245_v23 = vadd.f32 %v1240_v48, %v1191_v16  ;;  %v1265_v35 = vadd.f32 %v1259_v54, %v2907_v41  ;;  %v1266_v24 = vadd.f32 %v1261_v62, %v1198_v21  ;;  %v1286_v39 = vadd.f32 %v1280_v34, %v2910_v42 }
 0x2e9   : > { %v1287_v25 = vadd.f32 %v1282_v22, %v1205_v31  ;;  %v1288_v17 = vadd.f32 %v1281_v43, %v1206_v47  ;;  %v1293_v0 = vmul.f32 %v2919_v50, %v2955_v9  ;;  %v1294_v1 = vmul.f32 %v2919_v50, %v2952_v8 }
 0x2ea   : > { %v1301_v40 = vmul.f32 %v2921_v51, %v2955_v9  ;;  %v1302_v5 = vmul.f32 %v2921_v51, %v2952_v8  ;;  %v1306_v16 = vadd.f32 %v1303_v10, %v1246_v53  ;;  %v1311_v41 = vmul.f32 %v2923_v52, %v2955_v9 }
 0x2eb   : > { %v1295_v26 = vadd.f32 %v1293_v0, %v1224_v45  ;;  %v1296_v42 = vadd.f32 %v1294_v1, %v1225_v18  ;;  %v1312_v27 = vmul.f32 %v2923_v52, %v2952_v8  ;;  %v1316_v28 = vadd.f32 %v1313_v11, %v1267_v19 }
 0x2ec   : > { %v1304_v29 = vadd.f32 %v1301_v40, %v1244_v49  ;;  %v1305_v32 = vadd.f32 %v1302_v5, %v1245_v23  ;;  %v1314_v33 = vadd.f32 %v1311_v41, %v1265_v35  ;;  %v1331_v50 = vmul.f32 %v2927_v56, %v2955_v9 }
 0x2ed   : > { %v1315_v36 = vadd.f32 %v1312_v27, %v1266_v24  ;;  %v1321_v51 = vmul.f32 %v2925_v55, %v2955_v9  ;;  %v1332_v10 = vmul.f32 %v2927_v56, %v2952_v8  ;;  %v1350_v20 = vmul.f32 %v2929_v57, %v2955_v9 }
 0x2ee   : > { %v1322_v52 = vmul.f32 %v2925_v55, %v2952_v8  ;;  %v1326_v11 = vadd.f32 %v2963_v12, %v1288_v17  ;;  %v1337_v37 = vrot.slane %v1331_v50, 4  ;;  %v1351_v38 = vmul.f32 %v2929_v57, %v2952_v8 }
 0x2ef   : > { %v1338_v43 = vrot.slane %v1332_v10, 4  ;;  %v1356_v21 = vrot.slane %v1350_v20, 4  ;;  %v1371_v44 = vmul.f32 %v2931_v58, %v2955_v9  ;;  %v1372_v56 = vmul.f32 %v2931_v58, %v2952_v8 }
 0x2f0   : > { %v1324_v30 = vadd.f32 %v1321_v51, %v1286_v39  ;;  %v1340_v46 = vrot.slane %v2967_v13, 4  ;;  %v1357_v31 = vrot.slane %v1351_v38, 4  ;;  %v1359_v55 = vrot.slane %v2971_v14, 4 }
 0x2f1   : > { %v1325_v47 = vadd.f32 %v1322_v52, %v1287_v25  ;;  %v1377_v12 = vrot.slane %v1371_v44, 4  ;;  %v1378_v45 = vrot.slane %v1372_v56, 4  ;;  %v1392_v57 = vmul.f32 %v2941_v2, %v2955_v9 }
 0x2f2   : > { %v1339_v48 = vsel %vm972_vm5, %v1337_v37, %v1338_v43  ;;  %v1358_v53 = vsel %vm972_vm5, %v1356_v21, %v1357_v31  ;;  %v1366_v54 = vadd.f32 %v1359_v55, %v1306_v16  ;;  %v1380_v62 = vrot.slane %v2975_v15, 4 }
 0x2f3   : > { %v1341_v58 = vsel %vm972_vm5, %v1338_v43, %v1340_v46  ;;  %v1344_v34 = vadd.f32 %v1339_v48, %v1295_v26  ;;  %v1360_v13 = vsel %vm972_vm5, %v1357_v31, %v1359_v55  ;;  %v1364_v18 = vadd.f32 %v1358_v53, %v1304_v29 }
 0x2f4   : > { %v1365_v14 = vadd.f32 %v1360_v13, %v1305_v32  ;;  %v1379_v49 = vsel %vm972_vm5, %v1377_v12, %v1378_v45  ;;  %v1381_v19 = vsel %vm972_vm5, %v1378_v45, %v1380_v62  ;;  %v1393_v9 = vmul.f32 %v2941_v2, %v2952_v8  ;;  %v1819_v12 = vld [vmem:[%s3117_s8] ss:$0 sm:$0xff] }
 0x2f5   : > { %v1385_v22 = vadd.f32 %v1379_v49, %v1314_v33  ;;  %v1386_v23 = vadd.f32 %v1381_v19, %v1315_v36  ;;  %v1394_v35 = vmul.f32 %v2941_v2, %v2938_v61  ;;  %v1398_v15 = vrot.slane %v1392_v57, 4  ;;  %v1820_v13 = vld [vmem:[%s3119_s10] ss:$0 sm:$0xff] }
 0x2f6   : > { %v1387_v24 = vadd.f32 %v1380_v62, %v1316_v28  ;;  %v1399_v39 = vrot.slane %v1393_v9, 4  ;;  %v1421_v25 = vmul.f32 %v2933_v59, %v2952_v8  ;;  %v1422_v17 = vmul.f32 %v2933_v59, %v2938_v61  ;;  %v1586_v62 = vld [vmem:[%s3120_s11 + $0x10] sm:$0xff] }
 0x2f7   : > { %v1345_v0 = vadd.f32 %v1341_v58, %v1296_v42  ;;  %v1401_v1 = vrot.slane %v1394_v35, 4  ;;  %v1426_v40 = vadd.f32 %v2946_v6, %v1366_v54  ;;  %v1431_v5 = vmul.f32 %v2935_v60, %v2952_v8  ;;  %v1587_v54 = vld [vmem:[%s3120_s11 + $0x18] sm:$0xff]  ;;  %v1585_v58 = vld [vmem:[%s3120_s11 + $0x8] sm:$0xff] }
 0x2f8   : > { %v1400_v16 = vsel %vm972_vm5, %v1398_v15, %v1399_v39  ;;  %v1424_v41 = vadd.f32 %v1421_v25, %v1364_v18  ;;  %v1425_v2 = vadd.f32 %v1422_v17, %v1365_v14  ;;  %v1432_v26 = vmul.f32 %v2935_v60, %v2938_v61  ;;  %2292 = vmatprep.subr.mxu0 %v1587_v54 }
 0x2f9   : > { %v1402_v27 = vsel %vm972_vm5, %v1399_v39, %v1401_v1  ;;  %v1406_v28 = vadd.f32 %v1400_v16, %v1324_v30  ;;  %v1408_v29 = vadd.f32 %v1401_v1, %v1326_v11  ;;  %v1434_v32 = vadd.f32 %v1431_v5, %v1385_v22  ;;  %2293 = vmatpush3.msra.mxu0 %v1587_v54  ;;  %v2315_v39 = vld [vmem:[%s2423_s21 + $0x8] sm:$0xff] }
 0x2fa   : > { %v1407_v59 = vadd.f32 %v1402_v27, %v1325_v47  ;;  %v1435_v42 = vadd.f32 %v1432_v26, %v1386_v23  ;;  %v1436_v33 = vadd.f32 %v2949_v7, %v1387_v24  ;;  %v1440_v6 = vrot.slane %v1424_v41, 1  ;;  %2294 = vmatprep.subr.mxu0 %v1586_v62  ;;  %v1821_v23 = vld [vmem:[%s3121_s12] ss:$0 sm:$0xff] }
 0x2fb   : > { %v1441_v50 = vrot.slane %v1425_v2, 1  ;;  %v1443_v36 = vrot.slane %v1426_v40, 1  ;;  %v1452_v51 = vrot.slane %v1406_v28, 1  ;;  %v1455_v10 = vrot.slane %v1408_v29, 1  ;;  %2295 = vmatpush3.msra.mxu0 %v1586_v62 }
 0x2fc   : > { %v1413_v20 = vmul.f32 %v2943_v4, %v2952_v8  ;;  %v1414_v60 = vmul.f32 %v2943_v4, %v2938_v61  ;;  %v1453_v52 = vrot.slane %v1407_v59, 1  ;;  %2296 = vmatprep.subr.mxu0 %v1585_v58 }
 0x2fd   : > { %v1442_v37 = vsel %vm872_vm3, %v1440_v6, %v1441_v50  ;;  %v1444_v11 = vsel %vm872_vm3, %v1441_v50, %v1443_v36  ;;  %v1462_v38 = vadd.f32 %v1455_v10, %v1436_v33  ;;  %2297 = vmatpush3.msra.mxu0 %v1585_v58 }
 0x2fe   : > { %v1415_v43 = vadd.f32 %v1413_v20, %v1344_v34  ;;  %v1416_v21 = vadd.f32 %v1414_v60, %v1345_v0  ;;  %v1454_v7 = vsel %vm872_vm3, %v1452_v51, %v1453_v52  ;;  %v1456_v44 = vsel %vm872_vm3, %v1453_v52, %v1455_v10  ;;  %v1584_v34 = vld [vmem:[%s3120_s11] sm:$0xff] }
 0x2ff   : > { %v1460_v56 = vadd.f32 %v1454_v7, %v1434_v32  ;;  %v1461_v30 = vadd.f32 %v1456_v44, %v1435_v42  ;;  %v1469_v47 = vrot.slane %v1462_v38, 2  ;;  %2298 = vmatprep.subr.mxu0 %v1584_v34 }
 0x300   : > { %v1447_v46 = vadd.f32 %v1442_v37, %v1415_v43  ;;  %v1448_v31 = vadd.f32 %v1444_v11, %v1416_v21  ;;  %2299 = vmatpush3.msra.mxu0 %v1584_v34 }
 0x301   : > { %v1466_v8 = vrot.slane %v1460_v56, 2  ;;  %v1467_v55 = vrot.slane %v1461_v30, 2 }
 0x303   : > { %v1468_v61 = vsel %vm614_vm2, %v1466_v8, %v1467_v55  ;;  %v1470_v4 = vsel %vm614_vm2, %v1467_v55, %v1469_v47 }
 0x304   : > { %v1473_v45 = vadd.f32 %v1468_v61, %v1447_v46  ;;  %v1474_v57 = vadd.f32 %v1470_v4, %v1448_v31 }
 0x306   : > { %v1482_v48 = vadd.f32 %v1819_v12, %v1473_v45  ;;  %v1483_v53 = vadd.f32 %v1819_v12, %v1474_v57 }
 0x308   : > { %2265 = vmatprep.mubr.f32.mxu1 %v1482_v48 }
 0x309   : > { %2266 = vmatmul.mubr.f32.vlgmr.msra.gmra.mxu1 %v1483_v53 }
 0x3c9   : > { %v2267_v18 = vpop.f32.mrf.mxu1 }
 0x3ca   : > { %v1579_v14 = vadd.f32 %v2267_v18, %v1820_v13 }
 0x3cb   : > { %v1573_v49 = vpop.f32.mrf.mxu1 }
 0x3cc   : > { %v1574_v19 = vadd.f32 %v1820_v13, %v1573_v49  ;;  %v1583_v22 = vmul.f32 %v1579_v14, %v2568_v63 }
 0x3ce   : > { %v1582_v9 = vmul.f32 %v1574_v19, %v2571_v3  ;;  %v2316_v3 = vld [vmem:[%s2423_s21] sm:$0xff] }
 0x3d0   : > { %2300 = vmatprep.mubr.f32.mxu0 %v1582_v9 }
 0x3d1   : > { %2301 = vmatmul.mubr.f32.vlgmr.msra.gmra.mxu0 %v1583_v22 }
 0x491   : > { %v2302_v35 = vpop.f32.mrf.mxu0 }
 0x492   : > { %v1679_v15 = vadd.f32 %v2302_v35, %v1821_v23 }
 0x493   : > { %v1673_v24 = vpop.f32.mrf.mxu0 }
 0x494   : > { %v1683_v25 = vadd.f32 %v2315_v39, %v1679_v15  ;;  %v1674_v17 = vadd.f32 %v1821_v23, %v1673_v24 }
 0x496   : > { %1685 = vst [vmem:[%s440_s23 + $0x8] sm:$0xff] %v1683_v25  ;;  %v1682_v63 = vadd.f32 %v2316_v3, %v1674_v17 }
 0x498   : > { %1684 = vst [vmem:[%s440_s23] sm:$0xff] %v1682_v63 }
 0x499 PF: > { %s23_s25 = sadd.s32 1, %s2323_s25  }
 0x49a   : > { %p20_p4 = scmp.ge.s32.totalorder %s23_s25, 4  }
 0x49c   :  { %22 = sbr.rel (!%p20_p4) target bundleno = 1 (0x1), region = 106 }

</bundles_post_ra>
